<compile_context>
chip_gen: v7x
topology: tpu7x:2x2x1
jax: 0.10.0
libtpu: 0.0.40
codegen_flags: <defaults>
</compile_context>

<pallas_src>
import jax
import jax.numpy as jnp
from jax import lax
from jax.experimental import pallas as pl
from jax.experimental.pallas import tpu as pltpu


def _elu(x):
    # ELU(alpha=1): x if x > 0 else exp(x) - 1 (where discards the unused branch).
    return jnp.where(x > 0, x, jnp.exp(x) - 1.0)


# ---------------------------------------------------------------------------
# Kernel 1: per-node degree + dense GCN linear, fused.
#   d[i] = rsqrt(sum_j A[i, j] + 1)        (single degree vector; A symmetric)
#   y[i] = (x[i] @ Wg) * d[i]              (emitted in bf16 for the MXU pass)
# Grid (row tiles, K tiles) over A; degrees accumulate across K in VMEM scratch.
# ---------------------------------------------------------------------------
def _gcn_prep_kernel(x_ref, a_ref, wg_ref, y_ref, d_ref, deg_acc):
    k = pl.program_id(1)

    @pl.when(k == 0)
    def _():
        deg_acc[...] = jnp.zeros_like(deg_acc)

    deg_acc[...] += jnp.sum(a_ref[...].astype(jnp.float32), axis=1, keepdims=True)

    @pl.when(k == pl.num_programs(1) - 1)
    def _():
        d = lax.rsqrt(deg_acc[...] + 1.0)          # +1 accounts for the self loop
        d_ref[...] = d
        xw = jnp.dot(x_ref[...], wg_ref[...], preferred_element_type=jnp.float32)
        y_ref[...] = (xw * d).astype(y_ref.dtype)


# ---------------------------------------------------------------------------
# Kernel 2: tiled propagation + fused MLP head + softmax.
#   acc[i_tile] = sum_k A[i_tile, k_tile] @ y[k_tile]   (+ y[i_tile] when k == i)
#   z = elu(acc * d[i_tile] + bg);  h = elu(z W1 + b1) W2p + b2p;  S = softmax(h)
# ---------------------------------------------------------------------------
def _gnnpool_kernel(y_ref, d_ref, a_ref, bg_ref, w1_ref, b1_ref, w2_ref, b2_ref,
                    s_ref, acc_ref):
    i = pl.program_id(0)
    k = pl.program_id(1)

    @pl.when(k == 0)
    def _():
        acc_ref[...] = jnp.zeros_like(acc_ref)

    # bf16 x bf16 -> f32 on the MXU; this is the dominant (HBM-bound) matmul.
    acc_ref[...] += jnp.dot(a_ref[...], y_ref[...],
                            preferred_element_type=jnp.float32)

    # Self-loop of (A + I): this K tile covers the row tile's own nodes.
    @pl.when(k == i)
    def _():
        acc_ref[...] += y_ref[...].astype(jnp.float32)

    @pl.when(k == pl.num_programs(1) - 1)
    def _():
        # GCNConv bias is applied after propagation (PyG semantics), then ELU.
        z = _elu(acc_ref[...] * d_ref[...] + bg_ref[...])
        h1 = _elu(jnp.dot(z, w1_ref[...],
                          preferred_element_type=jnp.float32) + b1_ref[...])
        # TODO(synk): training-mode Dropout(0.25) not implemented (eval-only kernel).
        h = jnp.dot(h1, w2_ref[...],
                    preferred_element_type=jnp.float32) + b2_ref[...]
        # Softmax over the (lane-padded) cluster dim; padded logits are -1e30 -> 0.
        m = jnp.max(h, axis=-1, keepdims=True)
        e = jnp.exp(h - m)
        inv = pl.reciprocal(jnp.sum(e, axis=-1, keepdims=True), approx=True)
        s_ref[...] = (e * inv).astype(s_ref.dtype)


def gnnpool_forward(x, A, params, *, tile=256):
    """Returns (A, S) exactly like GNNpool.forward (eval mode)."""
    N, F = x.shape
    C = params["wg"].shape[1]
    H = params["w1"].shape[1]
    K = params["w2"].shape[1]

    LANES = 128
    Kp = ((K + LANES - 1) // LANES) * LANES          # lane-dense cluster dim
    Np = ((N + tile - 1) // tile) * tile             # pad node count to tile size
    nt = Np // tile

    # bf16 is exact for a 0/1 adjacency; halves HBM/VMEM traffic of the big matmul.
    A_bf = A.astype(jnp.bfloat16)
    x_p = x.astype(jnp.float32)
    if Np != N:
        A_bf = jnp.pad(A_bf, ((0, Np - N), (0, Np - N)))
        x_p = jnp.pad(x_p, ((0, Np - N), (0, 0)))

    # Pad the classifier to 128 output lanes; pad biases of -1e30 make the padded
    # softmax columns exactly 0, so slicing afterwards recovers the true softmax.
    w2p = jnp.pad(params["w2"], ((0, 0), (0, Kp - K)))
    b2p = jnp.pad(params["b2"], ((0, 0), (0, Kp - K)), constant_values=-1e30)

    compiler_params = pltpu.CompilerParams(
        dimension_semantics=("parallel", "arbitrary"),   # rows across TCs, K serial
        vmem_limit_bytes=32 * 1024 * 1024,               # safe on v5e / v6e / v7x
    )

    # ---- pass 1: degrees + dense GCN linear --------------------------------
    prep_cost = pl.CostEstimate(
        flops=int(Np * Np + 2 * Np * F * C),
        transcendentals=int(Np),
        bytes_accessed=int(Np * Np * 2 + Np * F * 4 + F * C * 4
                           + Np * C * 2 + Np * 4),
    )
    y, d = pl.pallas_call(
        _gcn_prep_kernel,
        out_shape=(jax.ShapeDtypeStruct((Np, C), jnp.bfloat16),
                   jax.ShapeDtypeStruct((Np, 1), jnp.float32)),
        grid_spec=pltpu.PrefetchScalarGridSpec(
            num_scalar_prefetch=0,
            grid=(nt, nt),
            in_specs=[
                pl.BlockSpec((tile, F), lambda i, k: (i, 0)),       # x rows
                pl.BlockSpec((tile, tile), lambda i, k: (i, k)),    # A tile
                pl.BlockSpec((F, C), lambda i, k: (0, 0)),          # Wg
            ],
            out_specs=[
                pl.BlockSpec((tile, C), lambda i, k: (i, 0)),       # y
                pl.BlockSpec((tile, 1), lambda i, k: (i, 0)),       # d
            ],
            scratch_shapes=[pltpu.VMEM((tile, 1), jnp.float32)],
        ),
        compiler_params=compiler_params,
        cost_estimate=prep_cost,
    )(x_p, A_bf, params["wg"])

    # ---- pass 2: propagation + bias + MLP head + softmax --------------------
    main_cost = pl.CostEstimate(
        flops=int(2 * Np * Np * C + 2 * Np * C * H + 2 * Np * H * Kp),
        transcendentals=int(Np * (C + H + Kp)),
        bytes_accessed=int(Np * Np * 2 + nt * Np * C * 2 + Np * 4
                           + (C + C * H + H + H * Kp + Kp) * 4 + Np * Kp * 4),
    )
    S_pad = pl.pallas_call(
        _gnnpool_kernel,
        out_shape=jax.ShapeDtypeStruct((Np, Kp), jnp.float32),
        grid_spec=pltpu.PrefetchScalarGridSpec(
            num_scalar_prefetch=0,
            grid=(nt, nt),
            in_specs=[
                pl.BlockSpec((tile, C), lambda i, k: (k, 0)),       # y[k_tile]
                pl.BlockSpec((tile, 1), lambda i, k: (i, 0)),       # d[i_tile]
                pl.BlockSpec((tile, tile), lambda i, k: (i, k)),    # A tile
                pl.BlockSpec((1, C), lambda i, k: (0, 0)),          # bg
                pl.BlockSpec((C, H), lambda i, k: (0, 0)),          # W1
                pl.BlockSpec((1, H), lambda i, k: (0, 0)),          # b1
                pl.BlockSpec((H, Kp), lambda i, k: (0, 0)),         # W2 (padded)
                pl.BlockSpec((1, Kp), lambda i, k: (0, 0)),         # b2 (padded)
            ],
            out_specs=pl.BlockSpec((tile, Kp), lambda i, k: (i, 0)),
            scratch_shapes=[pltpu.VMEM((tile, C), jnp.float32)],
        ),
        compiler_params=compiler_params,
        cost_estimate=main_cost,
    )(y, d, A_bf, params["bg"], params["w1"], params["b1"], w2p, b2p)

    S = S_pad[:N, :K]
    return A, S


def init_params(key, input_dim, conv_hidden, mlp_hidden, num_clusters):
    """Deterministic Glorot-style init; biases kept as [1, out] rows for TPU."""
    ks = jax.random.split(key, 6)

    def glorot(k, fan_in, fan_out):
        scale = jnp.sqrt(6.0 / (fan_in + fan_out))
        return jax.random.uniform(k, (fan_in, fan_out), jnp.float32, -scale, scale)

    def bias(k, fan_out):
        return jax.random.uniform(k, (1, fan_out), jnp.float32, -0.1, 0.1)

    return {
        "wg": glorot(ks[0], input_dim, conv_hidden),
        "bg": bias(ks[1], conv_hidden),
        "w1": glorot(ks[2], conv_hidden, mlp_hidden),
        "b1": bias(ks[3], mlp_hidden),
        "w2": glorot(ks[4], mlp_hidden, num_clusters),
        "b2": bias(ks[5], num_clusters),
    }


def gnnpool_reference(x, A, params):
    """Pure-JAX reference of the same forward pass (for correctness check)."""
    N = x.shape[0]
    A_hat = A + jnp.eye(N, dtype=A.dtype)
    deg = jnp.sum(A_hat, axis=1, keepdims=True)
    dinv = lax.rsqrt(deg)
    A_norm = A_hat * dinv * dinv.T
    # PyG GCNConv: propagate(X W) then + bias.
    z = _elu(A_norm @ (x @ params["wg"]) + params["bg"])
    h1 = _elu(z @ params["w1"] + params["b1"])
    h = h1 @ params["w2"] + params["b2"]
    return jax.nn.softmax(h, axis=-1)


if __name__ == "__main__":
    # Small, module-consistent shapes (N deliberately not a tile multiple to
    # exercise the padding path; grid is 2x2 row/K tiles).
    N = 500
    input_dim = 32
    conv_hidden = 64
    mlp_hidden = 64
    num_clusters = 10

    key = jax.random.PRNGKey(0)
    kx, ka, kp = jax.random.split(key, 3)

    # Node features.
    x = jax.random.normal(kx, (N, input_dim), jnp.float32)

    # Symmetric 0/1 adjacency with empty diagonal.
    rand = jax.random.uniform(ka, (N, N))
    A = (rand < 0.1).astype(jnp.float32)
    A = jnp.maximum(A, A.T) * (1.0 - jnp.eye(N, dtype=jnp.float32))

    params = init_params(kp, input_dim, conv_hidden, mlp_hidden, num_clusters)

    A_out, S = gnnpool_forward(x, A, params)
    jax.block_until_ready((A_out, S))

    assert S.shape == (N, num_clusters)
    assert bool(jnp.all(jnp.isfinite(S)))
    # softmax rows sum to 1 (approx reciprocal -> loose tolerance)
    assert bool(jnp.allclose(jnp.sum(S, axis=-1), 1.0, atol=2e-2))

    # compare against pure-JAX reference (bf16 A/Y path -> loose tolerance)
    S_ref = gnnpool_reference(x, A, params)
    assert bool(jnp.allclose(S, S_ref, atol=2e-2, rtol=2e-2))

    print("KERNEL_OK")
</pallas_src>

<mosaic_0001>
module attributes {stable_mosaic.version = 11 : i64} {
  func.func @_gcn_prep_kernel(%arg0: i32, %arg1: i32, %arg2: memref<256x32xf32, #tpu.memory_space<vmem>>, %arg3: memref<256x256xbf16, #tpu.memory_space<vmem>>, %arg4: memref<32x64xf32, #tpu.memory_space<vmem>>, %arg5: memref<256x64xbf16, #tpu.memory_space<vmem>>, %arg6: memref<256x1xf32, #tpu.memory_space<vmem>>, %arg7: memref<256x1xf32, #tpu.memory_space<vmem>>) attributes {dimension_semantics = [#tpu.dimension_semantics<parallel>, #tpu.dimension_semantics<arbitrary>], iteration_bounds = array<i64: 2, 2>, scalar_prefetch = 0 : i64, scratch_operands = 1 : i64, tpu.core_type = #tpu.core_type<tc>, window_params = [{transform_indices = @transform_0, window_bounds = array<i64: 256, 32>}, {transform_indices = @transform_1, window_bounds = array<i64: 256, 256>}, {pipeline_mode = #tpu.pipeline_mode<synchronous>, transform_indices = @transform_2, window_bounds = array<i64: 32, 64>}, {transform_indices = @transform_3, window_bounds = array<i64: 256, 64>}, {transform_indices = @transform_4, window_bounds = array<i64: 256, 1>}]} {
    %c0_i32 = arith.constant 0 : i32
    %0 = arith.cmpi eq, %arg1, %c0_i32 : i32
    %1 = arith.extui %0 : i1 to i32
    %c0_i32_0 = arith.constant 0 : i32
    %2 = arith.cmpi ne, %1, %c0_i32_0 : i32
    scf.if %2 {
      %cst_7 = arith.constant 0.000000e+00 : f32
      %13 = vector.broadcast %cst_7 : f32 to vector<256x1xf32>
      %c0_8 = arith.constant 0 : index
      %c0_9 = arith.constant 0 : index
      %14 = vector.load %arg7[%c0_8, %c0_9] : memref<256x1xf32, #tpu.memory_space<vmem>>, vector<256x1xf32>
      tpu.vector_store %arg7[%c0_8, %c0_9], %13 {strides = array<i32>} : memref<256x1xf32, #tpu.memory_space<vmem>>, vector<256x1xf32>,
    } else {
    }
    %c0 = arith.constant 0 : index
    %c0_1 = arith.constant 0 : index
    %3 = vector.load %arg7[%c0, %c0_1] : memref<256x1xf32, #tpu.memory_space<vmem>>, vector<256x1xf32>
    %c0_2 = arith.constant 0 : index
    %c0_3 = arith.constant 0 : index
    %4 = vector.load %arg3[%c0_2, %c0_3] : memref<256x256xbf16, #tpu.memory_space<vmem>>, vector<256x256xbf16>
    %5 = arith.extf %4 : vector<256x256xbf16> to vector<256x256xf32>
    %cst = arith.constant dense<0.000000e+00> : vector<256xf32>
    %6 = vector.multi_reduction <add>, %5, %cst [1] : vector<256x256xf32> to vector<256xf32>
    %7 = vector.shape_cast %6 : vector<256xf32> to vector<256x1xf32>
    %8 = arith.addf %3, %7 : vector<256x1xf32>
    %c0_4 = arith.constant 0 : index
    %c0_5 = arith.constant 0 : index
    %9 = vector.load %arg7[%c0_4, %c0_5] : memref<256x1xf32, #tpu.memory_space<vmem>>, vector<256x1xf32>
    tpu.vector_store %arg7[%c0_4, %c0_5], %8 {strides = array<i32>} : memref<256x1xf32, #tpu.memory_space<vmem>>, vector<256x1xf32>,
    %c1_i32 = arith.constant 1 : i32
    %10 = arith.cmpi eq, %arg1, %c1_i32 : i32
    %11 = arith.extui %10 : i1 to i32
    %c0_i32_6 = arith.constant 0 : i32
    %12 = arith.cmpi ne, %11, %c0_i32_6 : i32
    scf.if %12 {
      %c0_7 = arith.constant 0 : index
      %c0_8 = arith.constant 0 : index
      %13 = vector.load %arg7[%c0_7, %c0_8] : memref<256x1xf32, #tpu.memory_space<vmem>>, vector<256x1xf32>
      %cst_9 = arith.constant 1.000000e+00 : f32
      %14 = vector.broadcast %cst_9 : f32 to vector<256x1xf32>
      %15 = arith.addf %13, %14 : vector<256x1xf32>
      %16 = math.rsqrt %15 : vector<256x1xf32>
      %c0_10 = arith.constant 0 : index
      %c0_11 = arith.constant 0 : index
      %17 = vector.load %arg6[%c0_10, %c0_11] : memref<256x1xf32, #tpu.memory_space<vmem>>, vector<256x1xf32>
      tpu.vector_store %arg6[%c0_10, %c0_11], %16 {strides = array<i32>} : memref<256x1xf32, #tpu.memory_space<vmem>>, vector<256x1xf32>,
      %c0_12 = arith.constant 0 : index
      %c0_13 = arith.constant 0 : index
      %18 = vector.load %arg2[%c0_12, %c0_13] : memref<256x32xf32, #tpu.memory_space<vmem>>, vector<256x32xf32>
      %c0_14 = arith.constant 0 : index
      %c0_15 = arith.constant 0 : index
      %19 = vector.load %arg4[%c0_14, %c0_15] : memref<32x64xf32, #tpu.memory_space<vmem>>, vector<32x64xf32>
      %cst_16 = arith.constant dense<0.000000e+00> : vector<256x64xf32>
      %20 = tpu.matmul %18, %19, %cst_16 {dimension_numbers = #tpu.dot_dimension_numbers<[1], [0], [0], [1], [0, 0, 1, 1], [], []>} : vector<256x32xf32>, vector<32x64xf32>, vector<256x64xf32> -> vector<256x64xf32>
      %21 = vector.broadcast %16 : vector<256x1xf32> to vector<256x64xf32>
      %22 = arith.mulf %20, %21 : vector<256x64xf32>
      %23 = arith.truncf %22 : vector<256x64xf32> to vector<256x64xbf16>
      %c0_17 = arith.constant 0 : index
      %c0_18 = arith.constant 0 : index
      %24 = vector.load %arg5[%c0_17, %c0_18] : memref<256x64xbf16, #tpu.memory_space<vmem>>, vector<256x64xbf16>
      tpu.vector_store %arg5[%c0_17, %c0_18], %23 {strides = array<i32>} : memref<256x64xbf16, #tpu.memory_space<vmem>>, vector<256x64xbf16>,
    } else {
    }
    return
  }
  func.func @transform_0(%arg0: i32, %arg1: i32) -> (i32, i32) {
    %c0_i32 = arith.constant 0 : i32
    %c0_i32_0 = arith.constant 0 : i32
    return %arg0, %c0_i32 : i32, i32
  }
  func.func @transform_1(%arg0: i32, %arg1: i32) -> (i32, i32) {
    %c0_i32 = arith.constant 0 : i32
    return %arg0, %arg1 : i32, i32
  }
  func.func @transform_2(%arg0: i32, %arg1: i32) -> (i32, i32) {
    %c0_i32 = arith.constant 0 : i32
    %c0_i32_0 = arith.constant 0 : i32
    %c0_i32_1 = arith.constant 0 : i32
    return %c0_i32, %c0_i32_0 : i32, i32
  }
  func.func @transform_3(%arg0: i32, %arg1: i32) -> (i32, i32) {
    %c0_i32 = arith.constant 0 : i32
    %c0_i32_0 = arith.constant 0 : i32
    return %arg0, %c0_i32 : i32, i32
  }
  func.func @transform_4(%arg0: i32, %arg1: i32) -> (i32, i32) {
    %c0_i32 = arith.constant 0 : i32
    %c0_i32_0 = arith.constant 0 : i32
    return %arg0, %c0_i32 : i32, i32
  }
}

</mosaic_0001>

<bundles_post_ra>
// kernel: tpu_custom_call.1
= control target key start
LH: loop header
LB: loop body
LE: loop exit
PB: predicated region body
PF: predicated region fallthrough
CT: control target
= control target key end

     0   :  { %10 = vsyncpa [#allocation4], 0  ;;  %s2597_s0 = inlined_call_operand.vmem [shape: f32[512,32], index: 0, kind: input, shape index: {}]   ;;  %s2598_s1 = inlined_call_operand.hbm [shape: bf16[512,512], index: 1, kind: input, shape index: {}]   ;;  %s2599_s2 = inlined_call_operand.vmem [shape: f32[32,64], index: 2, kind: input, shape index: {}]   ;;  %s2600_s3 = inlined_call_operand.vmem [shape: bf16[512,64], index: 3, kind: output, shape index: {0}]   ;;  %s2601_s4 = inlined_call_operand.vmem [shape: f32[512,1], index: 4, kind: output, shape index: {1}]  }
   0x1   :  { %12 = vsyncpa [#allocation4 + $0x1], 0  ;;  %s2064_s15 = smov 0   ;;  %s2066_s16 = smov 0  }
   0x2   :  { %s2068_s17 = smov 0   ;;  %s2070_s18 = smov 0  }
   0x3   :  { %s2072_s19 = smov 0   ;;  %s2074_s20 = smov 0  }
   0x4   :  { %s2076_s21 = smov 0   ;;  %s2078_s22 = smov 0  }
   0x5 LB: > { %s1571_s23 = sadd.s32 4294967295, %s2031_s22   ;;  %s27_s24 = sadd.s32 1, %s2023_s20  ;;  %s2031_s22 = sphi %s2078_s22, %s18_s22   ;;  %s2027_s21 = sphi %s2076_s21, %s2614_s21   ;;  %s2023_s20 = sphi %s2074_s20, %s2613_s20   ;;  %s2019_s19 = sphi %s2072_s19, %s2612_s19   ;;  %s2015_s18 = sphi %s2070_s18, %s2611_s18   ;;  %s2011_s17 = sphi %s2068_s17, %s2610_s17   ;;  %s2007_s16 = sphi %s2066_s16, %s2609_s16   ;;  %s2003_s15 = sphi %s2064_s15, %s2608_s15  }
   0x6   : > { %p28_p0 = scmp.ge.s32.totalorder %s27_s24, 2  ;;  %s30_s25 = sadd.s32 1, %s2027_s21 }
   0x7   : > { %s65_s26 = sadd.s32 1, %s2011_s17  ;;  %p72_p1 = scmp.ne.s32.totalorder %s2011_s17, %s2007_s16 }
   0x8   : > { %s2616_s24 = smov (%p28_p0, %s27_s24), 0  ;;  %s2618_s25 = smov (!%p28_p0, %s30_s25), %s2027_s21 }
   0x9   : > { %2603 = sst [smem:[#allocation6_spill]] %s2616_s24  ;;  %s61_s27 = ssub.s32 %s2023_s20, %s2616_s24 }
   0xa   : > { %p73_p2 = scmp.eq.s32.totalorder %s2031_s22, 0  ;;  %p32_p3 = scmp.ge.s32.totalorder %s2618_s25, 2 }
   0xb   : > { %p78_p4 = scmp.ne.s32.totalorder %s2007_s16, %s2003_s15  ;;  %p79_p6 = scmp.eq.s32.totalorder %s1571_s23, 0 }
   0xc   : > { %p2115_p5 = por %p73_p2, %p72_p1  ;;  %s2620_s25 = smov (%p32_p3, %s2618_s25), 0 }
   0xd   : > { %p2121_p7 = por %p79_p6, %p78_p4  ;;  %s60_s30 = ssub.s32 %s2027_s21, %s2620_s25 }
   0xe   : > { %p1799_p8 = scmp.lt.s32.totalorder %s2031_s22, 4  ;;  %s62_s5 = sor.u32 %s61_s27, %s60_s30 }
   0xf   : > { %s187_s6 = sand.u32 1, %s2011_s17   ;;  %p63_p9 = scmp.eq.s32.totalorder %s62_s5, 0 }
  0x10   : > { %s1575_s7 = sshll.u32 %s187_s6, 8  ;;  %s1577_s8 = sshll.u32 %s2023_s20, 1 }
  0x11   : > { %s2131_s9 = scalar_select %p63_p9, %s2011_s17, %s65_s26  }
  0x12   : > { %s1656_s10 = sshll.u32 %s2027_s21, 7  ;;  %s191_s12 = scalar_lea.vmem [#allocation3], %s1575_s7 }
  0x13   : > { %s198_s11 = sadd.s32 %s1656_s10, %s1577_s8  ;;  %s201_s13 = sshll.u32 %s191_s12, 4  ;;  %s2134_s13 = int_to_ptr.vmem [resolvable:$true] %s201_s13 }
  0x14   : > { %s1579_s14 = sshll.u32 %s198_s11, 6  ;;  %p2145_p10 = pnand %p1799_p8, %p2115_p5 }
  0x15   : > { %s2139_s24 = scalar_lea.hbm %s2598_s1, %s1579_s14  ;;  %s2149_s27 = scalar_lea.sflag [#allocation4], %s187_s6 }
  0x16   : > { %s1935_s30 = scalar_lea.hbm %s2139_s24, 4096  ;;  %p1937_p12 = pneg %p2145_p10 }
  0x17   : > { %p1936_p11 = scmp.ne.s32.totalorder %s2139_s24, %s1935_s30  ;;  %s1940_s7 = scalar_lea.hbm %s2598_s1, 16384 }
  0x18   : > { %p1941_p1 = scmp.lt.u32.totalorder %s2139_s24, %s2598_s1  ;;  %p1942_p2 = scmp.lt.u32.totalorder %s1940_s7, %s1935_s30 }
  0x19   : > { %p1938_p13 = pnand %p1937_p12, %p1936_p11  ;;  %p1944_p4 = scmp.lt.u32.totalorder %s1935_s30, %s2139_s24 }
  0x1a   : > { %p1943_p3 = por %p1942_p2, %p1941_p1 }
  0x1b   : > { %p1939_p0 = pneg %p1938_p13 }
  0x1c   : > { %p1945_p5 = por %p1944_p4, %p1943_p3 }
  0x1e   : > { %p1946_p6 = pnand %p1945_p5, %p1939_p0 }
  0x20   : > { %1949 = shalt.err (!%p1946_p6)
}
  0x21   : > { %s1950_s6 = scalar_lea.vmem %s2134_s13, 4096  ;;  %s2033_s11 = smov [#allocation3]  }
  0x22   : > { %p1951_p8 = scmp.ne.s32.totalorder %s2134_s13, %s1950_s6  ;;  %s1955_s12 = sshll.u32 %s2033_s11, 4  ;;  %s1956_s12 = int_to_ptr.vmem [resolvable:$false] %s1955_s12 }
  0x23   : > { %s1957_s14 = scalar_lea.vmem %s1956_s12, 8192  ;;  %p1958_p13 = scmp.lt.s32.totalorder %s2134_s13, %s1956_s12 }
  0x24   : > { %p1953_p9 = pnand %p1951_p8, %p1937_p12  ;;  %p1959_p1 = scmp.lt.s32.totalorder %s1957_s14, %s1950_s6 }
  0x26   : > { %p1954_p11 = pneg %p1953_p9  ;;  %p1960_p2 = por %p1959_p1, %p1958_p13 }
  0x28   : > { %p1961_p3 = pnand %p1960_p2, %p1954_p11 }
  0x2a   : > { %1964 = shalt.err (!%p1961_p3)
}
  0x2b   : > { %s2034_s15 = smov 256   ;;  %s2035_s23 = smov 128  }
  0x2c   : > { %s2036_s30 = smov 8   ;;  %p1580_p12 = scmp.ge.s32.totalorder %s2031_s22, 1 }
  0x2d   : > { %1798 = dma.hbm_to_vmem [thread:$0]  (!%p2145_p10), %s2139_s24, 4096, %s2134_s13, %s2149_s27, %s2034_s15, %s2035_s23, %s2036_s30  }
  0x2e   : > { %p209_p0 = scmp.lt.s32.totalorder %s2031_s22, 5 }
  0x30   : > { %p210_p4 = pnand %p1580_p12, %p209_p0 }
  0x31   : > { %s215_s28 = sand.u32 (!%p210_p4), 1, %s2007_s16  }
  0x32   : > { %213 = sbr.rel (%p210_p4) target bundleno = 512 (0x200), region = 32  ;;  %s1581_s5 = sshll.u32 (!%p210_p4), %s215_s28, 8 }
  0x33   : > { %s216_s7 = scalar_lea.sflag (!%p210_p4), [#allocation4], %s215_s28  ;;  %s2180_s8 = scalar_lea.vmem (!%p210_p4), [#allocation3], %s1581_s5 }
  0x39   : > { %1998 = dma.done.wait (%p2121_p7), %s216_s7, 4096  }
  0x3a   : > { %2000 = vsyncadd (%p2121_p7), %s216_s7, 4294963200  ;;  %s1582_s10 = sshll.u32 %s2019_s19, 5  ;;  %p1588_p7 = scmp.ne.s32.totalorder %s2015_s18, 0 }
  0x3b   : > { %p255_p5 = scmp.lt.s32.totalorder %s1582_s10, 63  ;;  %vm278_vm0 = vcmask (!%p1588_p7), 7168   ;;  %v2037_v0 = vmov (!%p1588_p7), 0.0  }
  0x3c   : > { %277 = sbr.rel (%p1588_p7) target bundleno = 76 (0x4c), region = 40  ;;  %279 = vst.msk [vmem:[#allocation2] sm:$0xff] (!%p1588_p7), %vm278_vm0, %v2037_v0  ;;  %280 = vst.msk [vmem:[#allocation2 + $0x8] sm:$0xff] (!%p1588_p7), %vm278_vm0, %v2037_v0 }
  0x3d   : > { %s2622_s10 = smov (!%p255_p5, %s1582_s10), 63  ;;  %281 = vst.msk [vmem:[#allocation2 + $0x10] sm:$0xff] (!%p1588_p7), %vm278_vm0, %v2037_v0  ;;  %282 = vst.msk [vmem:[#allocation2 + $0x18] sm:$0xff] (!%p1588_p7), %vm278_vm0, %v2037_v0 }
  0x3e   : > { %s1583_s24 = sshll.u32 %s2622_s10, 3  ;;  %s1585_s13 = sshll.u32 %s2622_s10, 2  ;;  %283 = vst.msk [vmem:[#allocation2 + $0x20] sm:$0xff] (!%p1588_p7), %vm278_vm0, %v2037_v0  ;;  %284 = vst.msk [vmem:[#allocation2 + $0x28] sm:$0xff] (!%p1588_p7), %vm278_vm0, %v2037_v0 }
  0x3f   : > { %s2190_s6 = scalar_lea.vmem %s2597_s0, %s1583_s24  ;;  %s2195_s14 = scalar_lea.vmem %s2600_s3, %s1585_s13  ;;  %285 = vst.msk [vmem:[#allocation2 + $0x30] sm:$0xff] (!%p1588_p7), %vm278_vm0, %v2037_v0  ;;  %286 = vst.msk [vmem:[#allocation2 + $0x38] sm:$0xff] (!%p1588_p7), %vm278_vm0, %v2037_v0 }
  0x40   : > { %s2200_s29 = scalar_lea.vmem %s2601_s4, %s1583_s24  ;;  %287 = vst.msk [vmem:[#allocation2 + $0x40] sm:$0xff] (!%p1588_p7), %vm278_vm0, %v2037_v0  ;;  %288 = vst.msk [vmem:[#allocation2 + $0x48] sm:$0xff] (!%p1588_p7), %vm278_vm0, %v2037_v0 }
  0x41   : > { %289 = vst.msk [vmem:[#allocation2 + $0x50] sm:$0xff] (!%p1588_p7), %vm278_vm0, %v2037_v0  ;;  %290 = vst.msk [vmem:[#allocation2 + $0x58] sm:$0xff] (!%p1588_p7), %vm278_vm0, %v2037_v0 }
  0x42   : > { %291 = vst.msk [vmem:[#allocation2 + $0x60] sm:$0xff] (!%p1588_p7), %vm278_vm0, %v2037_v0  ;;  %292 = vst.msk [vmem:[#allocation2 + $0x68] sm:$0xff] (!%p1588_p7), %vm278_vm0, %v2037_v0 }
  0x43   : > { %293 = vst.msk [vmem:[#allocation2 + $0x70] sm:$0xff] %vm278_vm0, %v2037_v0  ;;  %294 = vst.msk [vmem:[#allocation2 + $0x78] sm:$0xff] %vm278_vm0, %v2037_v0 }
  0x44   : > { %295 = vst.msk [vmem:[#allocation2 + $0x80] sm:$0xff] %vm278_vm0, %v2037_v0  ;;  %296 = vst.msk [vmem:[#allocation2 + $0x88] sm:$0xff] %vm278_vm0, %v2037_v0 }
  0x45   : > { %297 = vst.msk [vmem:[#allocation2 + $0x90] sm:$0xff] %vm278_vm0, %v2037_v0  ;;  %298 = vst.msk [vmem:[#allocation2 + $0x98] sm:$0xff] %vm278_vm0, %v2037_v0 }
  0x46   : > { %299 = vst.msk [vmem:[#allocation2 + $0xa0] sm:$0xff] %vm278_vm0, %v2037_v0  ;;  %300 = vst.msk [vmem:[#allocation2 + $0xa8] sm:$0xff] %vm278_vm0, %v2037_v0 }
  0x47   : > { %301 = vst.msk [vmem:[#allocation2 + $0xb0] sm:$0xff] %vm278_vm0, %v2037_v0  ;;  %302 = vst.msk [vmem:[#allocation2 + $0xb8] sm:$0xff] %vm278_vm0, %v2037_v0 }
  0x48   : > { %303 = vst.msk [vmem:[#allocation2 + $0xc0] sm:$0xff] %vm278_vm0, %v2037_v0  ;;  %304 = vst.msk [vmem:[#allocation2 + $0xc8] sm:$0xff] %vm278_vm0, %v2037_v0 }
  0x49   : > { %305 = vst.msk [vmem:[#allocation2 + $0xd0] sm:$0xff] %vm278_vm0, %v2037_v0  ;;  %306 = vst.msk [vmem:[#allocation2 + $0xd8] sm:$0xff] %vm278_vm0, %v2037_v0 }
  0x4a   : > { %307 = vst.msk [vmem:[#allocation2 + $0xe0] sm:$0xff] %vm278_vm0, %v2037_v0  ;;  %308 = vst.msk [vmem:[#allocation2 + $0xe8] sm:$0xff] %vm278_vm0, %v2037_v0 }
  0x4b   : > { %309 = vst.msk [vmem:[#allocation2 + $0xf0] sm:$0xff] %vm278_vm0, %v2037_v0  ;;  %310 = vst.msk [vmem:[#allocation2 + $0xf8] sm:$0xff] %vm278_vm0, %v2037_v0 }
  0x4c PF: > { %v345_v1 = vld [vmem:[%s2180_s8 + $0x10] sm:$0xff]  ;;  %v343_v2 = vld [vmem:[%s2180_s8] sm:$0xff]  ;;  %v346_v3 = vld [vmem:[%s2180_s8 + $0x18] sm:$0xff]  ;;  %vm567_vm1 = vcmask 7168   ;;  %p1589_p10 = scmp.ne.s32.totalorder %s2015_s18, 1 }
  0x4d   : > { %v379_v4 = vunpack.c.l.bf16 %v345_v1  ;;  %v380_v5 = vunpack.c.h.bf16 %v345_v1  ;;  %v375_v6 = vunpack.c.l.bf16 %v343_v2  ;;  %v376_v7 = vunpack.c.h.bf16 %v343_v2  ;;  %v344_v8 = vld [vmem:[%s2180_s8 + $0x8] sm:$0xff]  ;;  %v347_v14 = vld [vmem:[%s2180_s8 + $0x20] sm:$0xff]  ;;  %v350_v23 = vld [vmem:[%s2180_s8 + $0x38] sm:$0xff] }
  0x4e   : > { %v348_v9 = vld [vmem:[%s2180_s8 + $0x28] sm:$0xff]  ;;  %v381_v10 = vunpack.c.l.bf16 %v346_v3  ;;  %v382_v11 = vunpack.c.h.bf16 %v346_v3  ;;  %v377_v12 = vunpack.c.l.bf16 %v344_v8  ;;  %v378_v13 = vunpack.c.h.bf16 %v344_v8  ;;  %v349_v24 = vld [vmem:[%s2180_s8 + $0x30] sm:$0xff]  ;;  %v351_v32 = vld [vmem:[%s2180_s8 + $0x40] sm:$0xff] }
  0x4f   : > { %v445_v15 = vadd.f32 %v380_v5, %v379_v4  ;;  %v439_v16 = vadd.f32 %v376_v7, %v375_v6  ;;  %v385_v17 = vunpack.c.l.bf16 %v348_v9  ;;  %v386_v18 = vunpack.c.h.bf16 %v348_v9  ;;  %v352_v31 = vld [vmem:[%s2180_s8 + $0x48] sm:$0xff]  ;;  %v354_v39 = vld [vmem:[%s2180_s8 + $0x58] sm:$0xff]  ;;  %v353_v40 = vld [vmem:[%s2180_s8 + $0x50] sm:$0xff] }
  0x50   : > { %v448_v19 = vadd.f32 %v382_v11, %v381_v10  ;;  %v442_v20 = vadd.f32 %v378_v13, %v377_v12  ;;  %v383_v21 = vunpack.c.l.bf16 %v347_v14  ;;  %v384_v22 = vunpack.c.h.bf16 %v347_v14  ;;  %v356_v47 = vld [vmem:[%s2180_s8 + $0x68] sm:$0xff]  ;;  %v355_v48 = vld [vmem:[%s2180_s8 + $0x60] sm:$0xff]  ;;  %v358_v55 = vld [vmem:[%s2180_s8 + $0x78] sm:$0xff] }
  0x51   : > { %446 = vadd.xlane.f32.xlu1 %v445_v15  ;;  %440 = vadd.xlane.f32.xlu0 %v439_v16  ;;  %v454_v25 = vadd.f32 %v386_v18, %v385_v17  ;;  %v389_v26 = vunpack.c.l.bf16 %v350_v23  ;;  %v390_v28 = vunpack.c.h.bf16 %v350_v23  ;;  %v387_v29 = vunpack.c.l.bf16 %v349_v24  ;;  %v357_v56 = vld [vmem:[%s2180_s8 + $0x70] sm:$0xff]  ;;  %v360_v63 = vld [vmem:[%s2180_s8 + $0x88] sm:$0xff]  ;;  %v359_v0 = vld [vmem:[%s2180_s8 + $0x80] sm:$0xff] }
  0x52   : > { %v451_v27 = vadd.f32 %v384_v22, %v383_v21  ;;  %v388_v30 = vunpack.c.h.bf16 %v349_v24  ;;  %v393_v33 = vunpack.c.l.bf16 %v352_v31  ;;  %v394_v34 = vunpack.c.h.bf16 %v352_v31  ;;  %v362_v7 = vld [vmem:[%s2180_s8 + $0x98] sm:$0xff]  ;;  %v361_v8 = vld [vmem:[%s2180_s8 + $0x90] sm:$0xff]  ;;  %v364_v15 = vld [vmem:[%s2180_s8 + $0xa8] sm:$0xff] }
  0x53   : > { %v460_v35 = vadd.f32 %v390_v28, %v389_v26  ;;  %v391_v37 = vunpack.c.l.bf16 %v351_v32  ;;  %v392_v38 = vunpack.c.h.bf16 %v351_v32  ;;  %v397_v42 = vunpack.c.l.bf16 %v354_v39  ;;  %v363_v16 = vld [vmem:[%s2180_s8 + $0xa0] sm:$0xff]  ;;  %v366_v23 = vld [vmem:[%s2180_s8 + $0xb8] sm:$0xff]  ;;  %v365_v24 = vld [vmem:[%s2180_s8 + $0xb0] sm:$0xff] }
  0x54   : > { %v457_v36 = vadd.f32 %v388_v30, %v387_v29  ;;  %v466_v41 = vadd.f32 %v394_v34, %v393_v33  ;;  %v398_v44 = vunpack.c.h.bf16 %v354_v39  ;;  %v395_v45 = vunpack.c.l.bf16 %v353_v40  ;;  %v368_v31 = vld [vmem:[%s2180_s8 + $0xc8] sm:$0xff]  ;;  %v367_v32 = vld [vmem:[%s2180_s8 + $0xc0] sm:$0xff]  ;;  %v370_v39 = vld [vmem:[%s2180_s8 + $0xd8] sm:$0xff] }
  0x55   : > { %449 = vadd.xlane.f32.xlu1 %v448_v19  ;;  %443 = vadd.xlane.f32.xlu0 %v442_v20  ;;  %v463_v43 = vadd.f32 %v392_v38, %v391_v37  ;;  %v396_v46 = vunpack.c.h.bf16 %v353_v40  ;;  %v401_v49 = vunpack.c.l.bf16 %v356_v47  ;;  %v402_v50 = vunpack.c.h.bf16 %v356_v47  ;;  %v369_v40 = vld [vmem:[%s2180_s8 + $0xd0] sm:$0xff]  ;;  %v372_v47 = vld [vmem:[%s2180_s8 + $0xe8] sm:$0xff] }
  0x56   : > { %v472_v51 = vadd.f32 %v398_v44, %v397_v42  ;;  %v399_v53 = vunpack.c.l.bf16 %v355_v48  ;;  %v400_v54 = vunpack.c.h.bf16 %v355_v48  ;;  %v405_v58 = vunpack.c.l.bf16 %v358_v55  ;;  %v371_v48 = vld [vmem:[%s2180_s8 + $0xe0] sm:$0xff] }
  0x57   : > { %v469_v52 = vadd.f32 %v396_v46, %v395_v45  ;;  %v478_v57 = vadd.f32 %v402_v50, %v401_v49  ;;  %v406_v60 = vunpack.c.h.bf16 %v358_v55  ;;  %v403_v61 = vunpack.c.l.bf16 %v357_v56  ;;  %v374_v55 = vld [vmem:[%s2180_s8 + $0xf8] sm:$0xff] }
  0x58   : > { %v475_v59 = vadd.f32 %v400_v54, %v399_v53  ;;  %v404_v62 = vunpack.c.h.bf16 %v357_v56  ;;  %v409_v1 = vunpack.c.l.bf16 %v360_v63  ;;  %v410_v2 = vunpack.c.h.bf16 %v360_v63  ;;  %v373_v56 = vld [vmem:[%s2180_s8 + $0xf0] sm:$0xff] }
  0x59   : > { %455 = vadd.xlane.f32.xlu1 %v454_v25  ;;  %452 = vadd.xlane.f32.xlu0 %v451_v27  ;;  %v484_v3 = vadd.f32 %v406_v60, %v405_v58  ;;  %v407_v5 = vunpack.c.l.bf16 %v359_v0  ;;  %v408_v6 = vunpack.c.h.bf16 %v359_v0  ;;  %v413_v10 = vunpack.c.l.bf16 %v362_v7 }
  0x5a   : > { %v481_v4 = vadd.f32 %v404_v62, %v403_v61  ;;  %v490_v9 = vadd.f32 %v410_v2, %v409_v1  ;;  %v414_v12 = vunpack.c.h.bf16 %v362_v7  ;;  %v411_v13 = vunpack.c.l.bf16 %v361_v8  ;;  %v313_v1 = vld [vmem:[#allocation2 + $0x10] sm:$0xff]  ;;  %v311_v2 = vld [vmem:[#allocation2] sm:$0xff]  ;;  %v314_v7 = vld [vmem:[#allocation2 + $0x18] sm:$0xff] }
  0x5b   : > { %v487_v11 = vadd.f32 %v408_v6, %v407_v5  ;;  %v412_v14 = vunpack.c.h.bf16 %v361_v8  ;;  %v417_v17 = vunpack.c.l.bf16 %v364_v15  ;;  %v418_v18 = vunpack.c.h.bf16 %v364_v15  ;;  %v312_v8 = vld [vmem:[#allocation2 + $0x8] sm:$0xff] }
  0x5c   : > { %v496_v19 = vadd.f32 %v414_v12, %v413_v10  ;;  %v415_v21 = vunpack.c.l.bf16 %v363_v16  ;;  %v416_v22 = vunpack.c.h.bf16 %v363_v16  ;;  %v421_v26 = vunpack.c.l.bf16 %v366_v23 }
  0x5d   : > { %461 = vadd.xlane.f32.xlu1 %v460_v35  ;;  %458 = vadd.xlane.f32.xlu0 %v457_v36  ;;  %v493_v20 = vadd.f32 %v412_v14, %v411_v13  ;;  %v502_v25 = vadd.f32 %v418_v18, %v417_v17  ;;  %v422_v28 = vunpack.c.h.bf16 %v366_v23  ;;  %v419_v29 = vunpack.c.l.bf16 %v365_v24  ;;  %v316_v13 = vld [vmem:[#allocation2 + $0x28] sm:$0xff]  ;;  %v315_v14 = vld [vmem:[#allocation2 + $0x20] sm:$0xff] }
  0x5e   : > { %v499_v27 = vadd.f32 %v416_v22, %v415_v21  ;;  %v420_v30 = vunpack.c.h.bf16 %v365_v24  ;;  %v425_v33 = vunpack.c.l.bf16 %v368_v31  ;;  %v426_v34 = vunpack.c.h.bf16 %v368_v31  ;;  %v322_v31 = vld [vmem:[#allocation2 + $0x58] sm:$0xff] }
  0x5f   : > { %v508_v35 = vadd.f32 %v422_v28, %v421_v26  ;;  %v423_v37 = vunpack.c.l.bf16 %v367_v32  ;;  %v424_v38 = vunpack.c.h.bf16 %v367_v32  ;;  %v429_v42 = vunpack.c.l.bf16 %v370_v39  ;;  %v319_v26 = vld [vmem:[#allocation2 + $0x40] sm:$0xff]  ;;  %v321_v32 = vld [vmem:[#allocation2 + $0x50] sm:$0xff] }
  0x60   : > { %v505_v36 = vadd.f32 %v420_v30, %v419_v29  ;;  %v430_v44 = vunpack.c.h.bf16 %v370_v39  ;;  %v427_v45 = vunpack.c.l.bf16 %v369_v40  ;;  %v428_v46 = vunpack.c.h.bf16 %v369_v40 }
  0x61   : > { %467 = vadd.xlane.f32.xlu1 %v466_v41  ;;  %464 = vadd.xlane.f32.xlu0 %v463_v43  ;;  %v514_v41 = vadd.f32 %v426_v34, %v425_v33  ;;  %v511_v43 = vadd.f32 %v424_v38, %v423_v37  ;;  %v433_v49 = vunpack.c.l.bf16 %v372_v47  ;;  %v434_v50 = vunpack.c.h.bf16 %v372_v47  ;;  %v324_v37 = vld [vmem:[#allocation2 + $0x68] sm:$0xff]  ;;  %v323_v38 = vld [vmem:[#allocation2 + $0x60] sm:$0xff] }
  0x62   : > { %v431_v53 = vunpack.c.l.bf16 %v371_v48  ;;  %v432_v54 = vunpack.c.h.bf16 %v371_v48  ;;  %v437_v58 = vunpack.c.l.bf16 %v374_v55  ;;  %v438_v60 = vunpack.c.h.bf16 %v374_v55  ;;  %v330_v55 = vld [vmem:[#allocation2 + $0x98] sm:$0xff] }
  0x63   : > { %v435_v61 = vunpack.c.l.bf16 %v373_v56  ;;  %v436_v62 = vunpack.c.h.bf16 %v373_v56  ;;  %v329_v56 = vld [vmem:[#allocation2 + $0x90] sm:$0xff]  ;;  %vm768_vm2 = vcmask (!%p1589_p10), 261120   ;;  %vm1410_vm3 = vcmask (!%p1589_p10), 519168  }
  0x64   : > { %v532_v63 = vadd.f32 %v438_v60, %v437_v58 }
  0x65   : > { %473 = vadd.xlane.f32.xlu1 %v472_v51  ;;  %470 = vadd.xlane.f32.xlu0 %v469_v52  ;;  %v520_v51 = vadd.f32 %v430_v44, %v429_v42  ;;  %v517_v52 = vadd.f32 %v428_v46, %v427_v45  ;;  %v529_v0 = vadd.f32 %v436_v62, %v435_v61  ;;  %v325_v44 = vld [vmem:[#allocation2 + $0x70] sm:$0xff]  ;;  %v332_v61 = vld [vmem:[#allocation2 + $0xa8] sm:$0xff]  ;;  %v331_v62 = vld [vmem:[#allocation2 + $0xa0] sm:$0xff] }
  0x69   : > { %479 = vadd.xlane.f32.xlu1 %v478_v57  ;;  %476 = vadd.xlane.f32.xlu0 %v475_v59  ;;  %v526_v57 = vadd.f32 %v434_v50, %v433_v49  ;;  %v523_v59 = vadd.f32 %v432_v54, %v431_v53  ;;  %v328_v49 = vld [vmem:[#allocation2 + $0x88] sm:$0xff]  ;;  %v327_v50 = vld [vmem:[#allocation2 + $0x80] sm:$0xff] }
  0x6d   : > { %485 = vadd.xlane.f32.xlu1 %v484_v3  ;;  %482 = vadd.xlane.f32.xlu0 %v481_v4 }
  0x71   : > { %491 = vadd.xlane.f32.xlu1 %v490_v9  ;;  %488 = vadd.xlane.f32.xlu0 %v487_v11 }
  0x75   : > { %497 = vadd.xlane.f32.xlu1 %v496_v19  ;;  %494 = vadd.xlane.f32.xlu0 %v493_v20  ;;  %v318_v19 = vld [vmem:[#allocation2 + $0x38] sm:$0xff]  ;;  %v317_v20 = vld [vmem:[#allocation2 + $0x30] sm:$0xff] }
  0x79   : > { %503 = vadd.xlane.f32.xlu1 %v502_v25  ;;  %500 = vadd.xlane.f32.xlu0 %v499_v27  ;;  %v320_v25 = vld [vmem:[#allocation2 + $0x48] sm:$0xff] }
  0x7d   : > { %509 = vadd.xlane.f32.xlu1 %v508_v35  ;;  %506 = vadd.xlane.f32.xlu0 %v505_v36 }
  0x81   : > { %515 = vadd.xlane.f32.xlu1 %v514_v41  ;;  %512 = vadd.xlane.f32.xlu0 %v511_v43  ;;  %v326_v43 = vld [vmem:[#allocation2 + $0x78] sm:$0xff] }
  0x85   : > { %521 = vadd.xlane.f32.xlu1 %v520_v51  ;;  %518 = vadd.xlane.f32.xlu0 %v517_v52 }
  0x89   : > { %527 = vadd.xlane.f32.xlu1 %v526_v57  ;;  %524 = vadd.xlane.f32.xlu0 %v523_v59 }
  0x8d   : > { %533 = vadd.xlane.f32.xlu1 %v532_v63  ;;  %530 = vadd.xlane.f32.xlu0 %v529_v0 }
  0xde   : > { %v447_v3 = vpop.xlane.xlu1 %446  ;;  %v441_v4 = vpop.xlane.xlu0 %440 }
  0xdf   : > { %v537_v5 = vadd.f32 %v447_v3, %v313_v1  ;;  %v535_v6 = vadd.f32 %v441_v4, %v311_v2  ;;  %v334_v3 = vld [vmem:[#allocation2 + $0xb8] sm:$0xff]  ;;  %v333_v4 = vld [vmem:[#allocation2 + $0xb0] sm:$0xff] }
  0xe1   : > { %570 = vst.msk [vmem:[#allocation2 + $0x10] sm:$0xff] %vm567_vm1, %v537_v5  ;;  %568 = vst.msk [vmem:[#allocation2] sm:$0xff] %vm567_vm1, %v535_v6 }
  0xe2   : > { %v450_v9 = vpop.xlane.xlu1 %449  ;;  %v444_v10 = vpop.xlane.xlu0 %443 }
  0xe3   : > { %v538_v11 = vadd.f32 %v450_v9, %v314_v7  ;;  %v536_v12 = vadd.f32 %v444_v10, %v312_v8  ;;  %v336_v9 = vld [vmem:[#allocation2 + $0xc8] sm:$0xff]  ;;  %v335_v10 = vld [vmem:[#allocation2 + $0xc0] sm:$0xff] }
  0xe5   : > { %571 = vst.msk [vmem:[#allocation2 + $0x18] sm:$0xff] %vm567_vm1, %v538_v11  ;;  %569 = vst.msk [vmem:[#allocation2 + $0x8] sm:$0xff] %vm567_vm1, %v536_v12 }
  0xe6   : > { %v456_v15 = vpop.xlane.xlu1 %455  ;;  %v453_v16 = vpop.xlane.xlu0 %452 }
  0xe7   : > { %v540_v17 = vadd.f32 %v456_v15, %v316_v13  ;;  %v539_v18 = vadd.f32 %v453_v16, %v315_v14  ;;  %v338_v15 = vld [vmem:[#allocation2 + $0xd8] sm:$0xff]  ;;  %v337_v16 = vld [vmem:[#allocation2 + $0xd0] sm:$0xff] }
  0xe9   : > { %573 = vst.msk [vmem:[#allocation2 + $0x28] sm:$0xff] %vm567_vm1, %v540_v17  ;;  %572 = vst.msk [vmem:[#allocation2 + $0x20] sm:$0xff] %vm567_vm1, %v539_v18 }
  0xea   : > { %v462_v21 = vpop.xlane.xlu1 %461  ;;  %v459_v22 = vpop.xlane.xlu0 %458 }
  0xeb   : > { %v542_v23 = vadd.f32 %v462_v21, %v318_v19  ;;  %v541_v24 = vadd.f32 %v459_v22, %v317_v20  ;;  %v340_v21 = vld [vmem:[#allocation2 + $0xe8] sm:$0xff]  ;;  %v339_v22 = vld [vmem:[#allocation2 + $0xe0] sm:$0xff] }
  0xed   : > { %575 = vst.msk [vmem:[#allocation2 + $0x38] sm:$0xff] %vm567_vm1, %v542_v23  ;;  %574 = vst.msk [vmem:[#allocation2 + $0x30] sm:$0xff] %vm567_vm1, %v541_v24 }
  0xee   : > { %v468_v27 = vpop.xlane.xlu1 %467  ;;  %v465_v28 = vpop.xlane.xlu0 %464 }
  0xef   : > { %v544_v29 = vadd.f32 %v468_v27, %v320_v25  ;;  %v543_v30 = vadd.f32 %v465_v28, %v319_v26  ;;  %v342_v27 = vld [vmem:[#allocation2 + $0xf8] sm:$0xff]  ;;  %v341_v28 = vld [vmem:[#allocation2 + $0xf0] sm:$0xff] }
  0xf1   : > { %577 = vst.msk [vmem:[#allocation2 + $0x48] sm:$0xff] %vm567_vm1, %v544_v29  ;;  %576 = vst.msk [vmem:[#allocation2 + $0x40] sm:$0xff] %vm567_vm1, %v543_v30 }
  0xf2   : > { %v474_v33 = vpop.xlane.xlu1 %473  ;;  %v471_v34 = vpop.xlane.xlu0 %470 }
  0xf3   : > { %v546_v35 = vadd.f32 %v474_v33, %v322_v31  ;;  %v545_v36 = vadd.f32 %v471_v34, %v321_v32  ;;  %v764_v33 = vld [vmem:[%s2599_s2] sm:$0xff] (!%p1589_p10)  ;;  %v765_v34 = vld [vmem:[%s2599_s2 + $0x8] sm:$0xff] (!%p1589_p10) }
  0xf5   : > { %579 = vst.msk [vmem:[#allocation2 + $0x58] sm:$0xff] %vm567_vm1, %v546_v35  ;;  %578 = vst.msk [vmem:[#allocation2 + $0x50] sm:$0xff] %vm567_vm1, %v545_v36  ;;  %v766_v35 = vld [vmem:[%s2599_s2 + $0x10] sm:$0xff] (!%p1589_p10)  ;;  %v1781_v36 = vpack.c.bf16 (!%p1589_p10), %v765_v34, %v764_v33  ;;  %v739_v34 = vld [vmem:[%s2190_s6 + $0x38] sm:$0xff] (!%p1589_p10) }
  0xf6   : > { %v480_v39 = vpop.xlane.xlu1 %479  ;;  %v477_v40 = vpop.xlane.xlu0 %476 }
  0xf7   : > { %v548_v41 = vadd.f32 %v480_v39, %v324_v37  ;;  %v547_v42 = vadd.f32 %v477_v40, %v323_v38  ;;  %v767_v37 = vld [vmem:[%s2599_s2 + $0x18] sm:$0xff] (!%p1589_p10)  ;;  %v732_v38 = vld [vmem:[%s2190_s6] sm:$0xff] (!%p1589_p10)  ;;  %v2038_v40 = vmov (!%p1589_p10), 0   ;;  %1782 = vmatprep.subr.bf16.mxu0 (!%p1589_p10), %v1781_v36  ;;  %1789 = vmatprep.subr.bf16.mxu1 (!%p1589_p10), %v1781_v36 }
  0xf8   : > { %v748_v39 = vld [vmem:[%s2190_s6 + $0x80] sm:$0xff] (!%p1589_p10)  ;;  %1870 = vset.pattern.permute.xlu1 (!%p1589_p10), %v2038_v40  ;;  %1869 = vset.pattern.permute.xlu0 (!%p1589_p10), %v2038_v40 }
  0xf9   : > { %581 = vst.msk [vmem:[#allocation2 + $0x68] sm:$0xff] %vm567_vm1, %v548_v41  ;;  %580 = vst.msk [vmem:[#allocation2 + $0x60] sm:$0xff] %vm567_vm1, %v547_v42  ;;  %v1785_v41 = vpack.c.bf16 (!%p1589_p10), %v767_v37, %v766_v35  ;;  %1733 = vmatprep.mubr.msk.f32.mxu0 (!%p1589_p10), %vm768_vm2, %v732_v38  ;;  %1757 = vmatprep.mubr.msk.f32.mxu1 (!%p1589_p10), %vm768_vm2, %v748_v39  ;;  %v606_v42 = vld [vmem:[#allocation2 + $0x10] sm:$0xff] (!%p1589_p10)  ;;  %v755_v35 = vld [vmem:[%s2190_s6 + $0xb8] sm:$0xff] (!%p1589_p10) }
  0xfa   : > { %v486_v45 = vpop.xlane.xlu1 %485  ;;  %v483_v46 = vpop.xlane.xlu0 %482  ;;  %1784 = vmatpush3.bf16.msra.mxu0 (!%p1589_p10), %v1781_v36  ;;  %1791 = vmatpush3.bf16.msra.mxu1 (!%p1589_p10), %v1781_v36  ;;  %v740_v39 = vld [vmem:[%s2190_s6 + $0x40] sm:$0xff] (!%p1589_p10) }
  0xfb   : > { %v550_v47 = vadd.f32 %v486_v45, %v326_v43  ;;  %v549_v48 = vadd.f32 %v483_v46, %v325_v44  ;;  %v604_v43 = vld [vmem:[#allocation2] sm:$0xff] (!%p1589_p10)  ;;  %v638_v44 = vadd.f32 (!%p1589_p10), 1.0, %v606_v42  ;;  %1786 = vmatprep.subr.bf16.mxu0 (!%p1589_p10), %v1785_v41  ;;  %1790 = vmatprep.subr.bf16.mxu1 (!%p1589_p10), %v1785_v41  ;;  %v607_v46 = vld [vmem:[#allocation2 + $0x18] sm:$0xff] (!%p1589_p10) }
  0xfc   : > { %v636_v45 = vadd.f32 (!%p1589_p10), 1.0, %v604_v43  ;;  %v756_v40 = vld [vmem:[%s2190_s6 + $0xc0] sm:$0xff] (!%p1589_p10) }
  0xfd   : > { %583 = vst.msk [vmem:[#allocation2 + $0x78] sm:$0xff] %vm567_vm1, %v550_v47  ;;  %582 = vst.msk [vmem:[#allocation2 + $0x70] sm:$0xff] %vm567_vm1, %v549_v48  ;;  %v605_v47 = vld [vmem:[#allocation2 + $0x8] sm:$0xff] (!%p1589_p10)  ;;  %1871 = vrsqrt.f32 (!%p1589_p10), %v638_v44  ;;  %v639_v48 = vadd.f32 (!%p1589_p10), 1.0, %v607_v46 }
  0xfe   : > { %v492_v51 = vpop.xlane.xlu1 %491  ;;  %v489_v52 = vpop.xlane.xlu0 %488  ;;  %1873 = vrsqrt.f32 (!%p1589_p10), %v636_v45  ;;  %1788 = vmatpush3.bf16.msra.mxu0 (!%p1589_p10), %v1785_v41  ;;  %1792 = vmatpush3.bf16.msra.mxu1 (!%p1589_p10), %v1785_v41 }
  0xff   : > { %v552_v53 = vadd.f32 %v492_v51, %v328_v49  ;;  %v551_v54 = vadd.f32 %v489_v52, %v327_v50  ;;  %v637_v49 = vadd.f32 (!%p1589_p10), 1.0, %v605_v47  ;;  %v609_v50 = vld [vmem:[#allocation2 + $0x28] sm:$0xff] (!%p1589_p10)  ;;  %v608_v51 = vld [vmem:[#allocation2 + $0x20] sm:$0xff] (!%p1589_p10)  ;;  %1875 = vrsqrt.f32 (!%p1589_p10), %v639_v48 }
 0x100   : > { %v733_v52 = vld [vmem:[%s2190_s6 + $0x8] sm:$0xff] (!%p1589_p10) }
 0x101   : > { %585 = vst.msk [vmem:[#allocation2 + $0x88] sm:$0xff] %vm567_vm1, %v552_v53  ;;  %584 = vst.msk [vmem:[#allocation2 + $0x80] sm:$0xff] %vm567_vm1, %v551_v54  ;;  %v749_v53 = vld [vmem:[%s2190_s6 + $0x88] sm:$0xff] (!%p1589_p10)  ;;  %v734_v54 = vld [vmem:[%s2190_s6 + $0x10] sm:$0xff] (!%p1589_p10)  ;;  %1877 = vrsqrt.f32 (!%p1589_p10), %v637_v49  ;;  %1734 = vmatmul.mubr.msk.f32.vlgmr.msra.gmra.mrb[0].mxu0 (!%p1589_p10), %vm768_vm2, %v733_v52 }
 0x102   : > { %v498_v57 = vpop.xlane.xlu1 %497  ;;  %v495_v58 = vpop.xlane.xlu0 %494  ;;  %1758 = vmatmul.mubr.msk.f32.vlgmr.msra.gmra.mrb[0].mxu1 (!%p1589_p10), %vm768_vm2, %v749_v53  ;;  %1736 = vmatprep.mubr.msk.f32.mxu0 (!%p1589_p10), %vm768_vm2, %v734_v54 }
 0x103   : > { %v554_v59 = vadd.f32 %v498_v57, %v330_v55  ;;  %v553_v60 = vadd.f32 %v495_v58, %v329_v56  ;;  %v641_v55 = vadd.f32 (!%p1589_p10), 1.0, %v609_v50  ;;  %v640_v56 = vadd.f32 (!%p1589_p10), 1.0, %v608_v51  ;;  %v750_v57 = vld [vmem:[%s2190_s6 + $0x90] sm:$0xff] (!%p1589_p10)  ;;  %v611_v58 = vld [vmem:[#allocation2 + $0x38] sm:$0xff] (!%p1589_p10)  ;;  %v741_v50 = vld [vmem:[%s2190_s6 + $0x48] sm:$0xff] (!%p1589_p10) }
 0x104   : > { %1760 = vmatprep.mubr.msk.f32.mxu1 (!%p1589_p10), %vm768_vm2, %v750_v57  ;;  %v757_v51 = vld [vmem:[%s2190_s6 + $0xc8] sm:$0xff] (!%p1589_p10) }
 0x105   : > { %587 = vst.msk [vmem:[#allocation2 + $0x98] sm:$0xff] %vm567_vm1, %v554_v59  ;;  %586 = vst.msk [vmem:[#allocation2 + $0x90] sm:$0xff] %vm567_vm1, %v553_v60  ;;  %v610_v59 = vld [vmem:[#allocation2 + $0x30] sm:$0xff] (!%p1589_p10)  ;;  %1879 = vrsqrt.f32 (!%p1589_p10), %v641_v55  ;;  %v643_v60 = vadd.f32 (!%p1589_p10), 1.0, %v611_v58 }
 0x106   : > { %v504_v63 = vpop.xlane.xlu1 %503  ;;  %v501_v0 = vpop.xlane.xlu0 %500  ;;  %1881 = vrsqrt.f32 (!%p1589_p10), %v640_v56  ;;  %v742_v55 = vld [vmem:[%s2190_s6 + $0x50] sm:$0xff] (!%p1589_p10) }
 0x107   : > { %v556_v1 = vadd.f32 %v504_v63, %v332_v61  ;;  %v555_v2 = vadd.f32 %v501_v0, %v331_v62  ;;  %v642_v61 = vadd.f32 (!%p1589_p10), 1.0, %v610_v59  ;;  %v613_v62 = vld [vmem:[#allocation2 + $0x48] sm:$0xff] (!%p1589_p10)  ;;  %v612_v63 = vld [vmem:[#allocation2 + $0x40] sm:$0xff] (!%p1589_p10)  ;;  %v735_v0 = vld [vmem:[%s2190_s6 + $0x18] sm:$0xff] (!%p1589_p10)  ;;  %1883 = vrsqrt.f32 (!%p1589_p10), %v643_v60 }
 0x108   : > { %1737 = vmatmul.mubr.msk.f32.gmra.mrb[2].mxu0 (!%p1589_p10), %vm768_vm2, %v735_v0  ;;  %v758_v56 = vld [vmem:[%s2190_s6 + $0xd0] sm:$0xff] (!%p1589_p10) }
 0x109   : > { %589 = vst.msk [vmem:[#allocation2 + $0xa8] sm:$0xff] %vm567_vm1, %v556_v1  ;;  %588 = vst.msk [vmem:[#allocation2 + $0xa0] sm:$0xff] %vm567_vm1, %v555_v2  ;;  %v751_v1 = vld [vmem:[%s2190_s6 + $0x98] sm:$0xff] (!%p1589_p10)  ;;  %v736_v2 = vld [vmem:[%s2190_s6 + $0x20] sm:$0xff] (!%p1589_p10)  ;;  %1885 = vrsqrt.f32 (!%p1589_p10), %v642_v61 }
 0x10a   : > { %v510_v5 = vpop.xlane.xlu1 %509  ;;  %v507_v6 = vpop.xlane.xlu0 %506  ;;  %1761 = vmatmul.mubr.msk.f32.gmra.mrb[2].mxu1 (!%p1589_p10), %vm768_vm2, %v751_v1  ;;  %1739 = vmatprep.mubr.msk.f32.mxu0 (!%p1589_p10), %vm768_vm2, %v736_v2  ;;  %v743_v2 = vld [vmem:[%s2190_s6 + $0x58] sm:$0xff] (!%p1589_p10) }
 0x10b   : > { %v558_v7 = vadd.f32 %v510_v5, %v334_v3  ;;  %v557_v8 = vadd.f32 %v507_v6, %v333_v4  ;;  %v645_v3 = vadd.f32 (!%p1589_p10), 1.0, %v613_v62  ;;  %v644_v4 = vadd.f32 (!%p1589_p10), 1.0, %v612_v63  ;;  %v752_v5 = vld [vmem:[%s2190_s6 + $0xa0] sm:$0xff] (!%p1589_p10)  ;;  %v615_v6 = vld [vmem:[#allocation2 + $0x58] sm:$0xff] (!%p1589_p10) }
 0x10c   : > { %1763 = vmatprep.mubr.msk.f32.mxu1 (!%p1589_p10), %vm768_vm2, %v752_v5 }
 0x10d   : > { %591 = vst.msk [vmem:[#allocation2 + $0xb8] sm:$0xff] %vm567_vm1, %v558_v7  ;;  %590 = vst.msk [vmem:[#allocation2 + $0xb0] sm:$0xff] %vm567_vm1, %v557_v8  ;;  %v614_v7 = vld [vmem:[#allocation2 + $0x50] sm:$0xff] (!%p1589_p10)  ;;  %v737_v8 = vld [vmem:[%s2190_s6 + $0x28] sm:$0xff] (!%p1589_p10)  ;;  %1887 = vrsqrt.f32 (!%p1589_p10), %v645_v3 }
 0x10e   : > { %v516_v11 = vpop.xlane.xlu1 %515  ;;  %v513_v12 = vpop.xlane.xlu0 %512  ;;  %1889 = vrsqrt.f32 (!%p1589_p10), %v644_v4  ;;  %1740 = vmatmul.mubr.msk.f32.gmra.mrb[4].mxu0 (!%p1589_p10), %vm768_vm2, %v737_v8  ;;  %v759_v3 = vld [vmem:[%s2190_s6 + $0xd8] sm:$0xff] (!%p1589_p10)  ;;  %v760_v8 = vld [vmem:[%s2190_s6 + $0xe0] sm:$0xff] (!%p1589_p10) }
 0x10f   : > { %v560_v13 = vadd.f32 %v516_v11, %v336_v9  ;;  %v559_v14 = vadd.f32 %v513_v12, %v335_v10  ;;  %v647_v9 = vadd.f32 (!%p1589_p10), 1.0, %v615_v6  ;;  %v646_v10 = vadd.f32 (!%p1589_p10), 1.0, %v614_v7  ;;  %v753_v11 = vld [vmem:[%s2190_s6 + $0xa8] sm:$0xff] (!%p1589_p10)  ;;  %v744_v7 = vld [vmem:[%s2190_s6 + $0x60] sm:$0xff] (!%p1589_p10) }
 0x110   : > { %v617_v12 = vld [vmem:[#allocation2 + $0x68] sm:$0xff] (!%p1589_p10)  ;;  %1764 = vmatmul.mubr.msk.f32.gmra.mrb[4].mxu1 (!%p1589_p10), %vm768_vm2, %v753_v11  ;;  %v624_v37 = vld [vmem:[#allocation2 + $0xa0] sm:$0xff] (!%p1589_p10) }
 0x111   : > { %593 = vst.msk [vmem:[#allocation2 + $0xc8] sm:$0xff] %vm567_vm1, %v560_v13  ;;  %592 = vst.msk [vmem:[#allocation2 + $0xc0] sm:$0xff] %vm567_vm1, %v559_v14  ;;  %v616_v13 = vld [vmem:[#allocation2 + $0x60] sm:$0xff] (!%p1589_p10)  ;;  %v1872_v14 = vpop.eup (!%p1589_p10), %1871  ;;  %1891 = vrsqrt.f32 (!%p1589_p10), %v647_v9  ;;  %v656_v47 = vadd.f32 (!%p1589_p10), 1.0, %v624_v37 }
 0x112   : > { %v522_v17 = vpop.xlane.xlu1 %521  ;;  %v519_v18 = vpop.xlane.xlu0 %518  ;;  %1102 = vperm.xlu1 (!%p1589_p10), %1870, %v1872_v14   ;;  %702 = vst.msk [vmem:[%s2200_s29 + $0x10] sm:$0xff] (!%p1589_p10), %vm567_vm1, %v1872_v14  ;;  %1893 = vrsqrt.f32 (!%p1589_p10), %v646_v10 }
 0x113   : > { %v562_v19 = vadd.f32 %v522_v17, %v338_v15  ;;  %v561_v20 = vadd.f32 %v519_v18, %v337_v16  ;;  %v738_v15 = vld [vmem:[%s2190_s6 + $0x30] sm:$0xff] (!%p1589_p10)  ;;  %v649_v17 = vadd.f32 (!%p1589_p10), 1.0, %v617_v12  ;;  %v648_v18 = vadd.f32 (!%p1589_p10), 1.0, %v616_v13 }
 0x114   : > { %v754_v16 = vld [vmem:[%s2190_s6 + $0xb0] sm:$0xff] (!%p1589_p10)  ;;  %1742 = vmatprep.mubr.msk.f32.mxu0 (!%p1589_p10), %vm768_vm2, %v738_v15  ;;  %v627_v42 = vld [vmem:[#allocation2 + $0xb8] sm:$0xff] (!%p1589_p10) }
 0x115   : > { %595 = vst.msk [vmem:[#allocation2 + $0xd8] sm:$0xff] %vm567_vm1, %v562_v19  ;;  %594 = vst.msk [vmem:[#allocation2 + $0xd0] sm:$0xff] %vm567_vm1, %v561_v20  ;;  %v619_v19 = vld [vmem:[#allocation2 + $0x78] sm:$0xff] (!%p1589_p10)  ;;  %v1874_v20 = vpop.eup (!%p1589_p10), %1873  ;;  %1895 = vrsqrt.f32 (!%p1589_p10), %v649_v17  ;;  %1766 = vmatprep.mubr.msk.f32.mxu1 (!%p1589_p10), %vm768_vm2, %v754_v16  ;;  %v626_v45 = vld [vmem:[#allocation2 + $0xb0] sm:$0xff] (!%p1589_p10)  ;;  %1743 = vmatmul.mubr.msk.f32.gmra.mrb[6].mxu0 (!%p1589_p10), %vm768_vm2, %v739_v34  ;;  %v659_v52 = vadd.f32 (!%p1589_p10), 1.0, %v627_v42 }
 0x116   : > { %v528_v23 = vpop.xlane.xlu1 %527  ;;  %v525_v24 = vpop.xlane.xlu0 %524  ;;  %1092 = vperm.xlu0 (!%p1589_p10), %1869, %v1874_v20   ;;  %700 = vst.msk [vmem:[%s2200_s29] sm:$0xff] (!%p1589_p10), %vm567_vm1, %v1874_v20  ;;  %1897 = vrsqrt.f32 (!%p1589_p10), %v648_v18  ;;  %1767 = vmatmul.mubr.msk.f32.gmra.mrb[6].mxu1 (!%p1589_p10), %vm768_vm2, %v755_v35  ;;  %v658_v57 = vadd.f32 (!%p1589_p10), 1.0, %v626_v45  ;;  %v745_v17 = vld [vmem:[%s2190_s6 + $0x68] sm:$0xff] (!%p1589_p10) }
 0x117   : > { %v564_v25 = vadd.f32 %v528_v23, %v340_v21  ;;  %v563_v26 = vadd.f32 %v525_v24, %v339_v22  ;;  %603 = sbr.rel (%p1589_p10) target bundleno = 512 (0x200), region = 44  ;;  %v651_v21 = vadd.f32 (!%p1589_p10), 1.0, %v619_v19  ;;  %v618_v22 = vld [vmem:[#allocation2 + $0x70] sm:$0xff] (!%p1589_p10)  ;;  %v621_v23 = vld [vmem:[#allocation2 + $0x88] sm:$0xff] (!%p1589_p10)  ;;  %v620_v24 = vld [vmem:[#allocation2 + $0x80] sm:$0xff] (!%p1589_p10)  ;;  %1745 = vmatprep.mubr.msk.f32.mxu0 (!%p1589_p10), %vm768_vm2, %v740_v39  ;;  %1769 = vmatprep.mubr.msk.f32.mxu1 (!%p1589_p10), %vm768_vm2, %v756_v40 }
 0x118   : > { %v629_v48 = vld [vmem:[#allocation2 + $0xc8] sm:$0xff] (!%p1589_p10)  ;;  %v628_v53 = vld [vmem:[#allocation2 + $0xc0] sm:$0xff] (!%p1589_p10) }
 0x119   : > { %597 = vst.msk [vmem:[#allocation2 + $0xe8] sm:$0xff] %vm567_vm1, %v564_v25  ;;  %596 = vst.msk [vmem:[#allocation2 + $0xe0] sm:$0xff] %vm567_vm1, %v563_v26  ;;  %v1876_v25 = vpop.eup (!%p1589_p10), %1875  ;;  %v650_v26 = vadd.f32 (!%p1589_p10), 1.0, %v618_v22  ;;  %1899 = vrsqrt.f32 (!%p1589_p10), %v651_v21  ;;  %v661_v60 = vadd.f32 (!%p1589_p10), 1.0, %v629_v48  ;;  %1746 = vmatmul.mubr.msk.f32.gmra.mrb[8].mxu0 (!%p1589_p10), %vm768_vm2, %v741_v50  ;;  %v660_v63 = vadd.f32 (!%p1589_p10), 1.0, %v628_v53  ;;  %v761_v18 = vld [vmem:[%s2190_s6 + $0xe8] sm:$0xff] (!%p1589_p10) }
 0x11a   : > { %v534_v29 = vpop.xlane.xlu1 %533  ;;  %v531_v30 = vpop.xlane.xlu0 %530  ;;  %703 = vst.msk [vmem:[%s2200_s29 + $0x18] sm:$0xff] (!%p1589_p10), %vm567_vm1, %v1876_v25  ;;  %1107 = vperm.xlu1 (!%p1589_p10), %1870, %v1876_v25   ;;  %1770 = vmatmul.mubr.msk.f32.gmra.mrb[8].mxu1 (!%p1589_p10), %vm768_vm2, %v757_v51  ;;  %v746_v21 = vld [vmem:[%s2190_s6 + $0x70] sm:$0xff] (!%p1589_p10) }
 0x11b   : > { %v566_v31 = vadd.f32 %v534_v29, %v342_v27  ;;  %v565_v32 = vadd.f32 %v531_v30, %v341_v28  ;;  %v653_v27 = vadd.f32 (!%p1589_p10), 1.0, %v621_v23  ;;  %v623_v28 = vld [vmem:[#allocation2 + $0x98] sm:$0xff] (!%p1589_p10)  ;;  %v622_v29 = vld [vmem:[#allocation2 + $0x90] sm:$0xff] (!%p1589_p10)  ;;  %v1878_v30 = vpop.eup (!%p1589_p10), %1877  ;;  %1901 = vrsqrt.f32 (!%p1589_p10), %v650_v26  ;;  %1748 = vmatprep.mubr.msk.f32.mxu0 (!%p1589_p10), %vm768_vm2, %v742_v55  ;;  %1772 = vmatprep.mubr.msk.f32.mxu1 (!%p1589_p10), %vm768_vm2, %v758_v56 }
 0x11c   : > { %v1880_v33 = vpop.eup (!%p1589_p10), %1879  ;;  %701 = vst.msk [vmem:[%s2200_s29 + $0x8] sm:$0xff] (!%p1589_p10), %vm567_vm1, %v1878_v30  ;;  %v655_v36 = vadd.f32 (!%p1589_p10), 1.0, %v623_v28  ;;  %v654_v41 = vadd.f32 (!%p1589_p10), 1.0, %v622_v29  ;;  %1097 = vperm.xlu0 (!%p1589_p10), %1869, %v1878_v30   ;;  %v631_v58 = vld [vmem:[#allocation2 + $0xd8] sm:$0xff] (!%p1589_p10)  ;;  %v630_v61 = vld [vmem:[#allocation2 + $0xd0] sm:$0xff] (!%p1589_p10) }
 0x11d   : > { %599 = vst.msk [vmem:[#allocation2 + $0xf8] sm:$0xff] %vm567_vm1, %v566_v31  ;;  %598 = vst.msk [vmem:[#allocation2 + $0xf0] sm:$0xff] %vm567_vm1, %v565_v32  ;;  %v652_v31 = vadd.f32 (!%p1589_p10), 1.0, %v620_v24  ;;  %v625_v32 = vld [vmem:[#allocation2 + $0xa8] sm:$0xff] (!%p1589_p10)  ;;  %v1882_v38 = vpop.eup (!%p1589_p10), %1881  ;;  %1903 = vrsqrt.f32 (!%p1589_p10), %v653_v27  ;;  %v663_v4 = vadd.f32 (!%p1589_p10), 1.0, %v631_v58  ;;  %v662_v9 = vadd.f32 (!%p1589_p10), 1.0, %v630_v61  ;;  %1749 = vmatmul.mubr.msk.f32.gmra.mrb[10].mxu0 (!%p1589_p10), %vm768_vm2, %v743_v2 }
 0x11e   : > { %705 = vst.msk [vmem:[%s2200_s29 + $0x28] sm:$0xff] %vm567_vm1, %v1880_v33  ;;  %v1884_v43 = vpop.eup %1883  ;;  %704 = vst.msk [vmem:[%s2200_s29 + $0x20] sm:$0xff] %vm567_vm1, %v1882_v38  ;;  %v657_v44 = vadd.f32 1.0, %v625_v32  ;;  %1117 = vperm.xlu1 %1870, %v1880_v33   ;;  %1773 = vmatmul.mubr.msk.f32.gmra.mrb[10].mxu1 %vm768_vm2, %v759_v3  ;;  %v762_v22 = vld [vmem:[%s2190_s6 + $0xf0] sm:$0xff]  ;;  %v747_v27 = vld [vmem:[%s2190_s6 + $0x78] sm:$0xff] }
 0x11f   : > { %v1886_v46 = vpop.eup %1885  ;;  %707 = vst.msk [vmem:[%s2200_s29 + $0x38] sm:$0xff] %vm567_vm1, %v1884_v43  ;;  %1905 = vrsqrt.f32 %v652_v31  ;;  %1751 = vmatprep.mubr.msk.f32.mxu0 %vm768_vm2, %v744_v7  ;;  %1775 = vmatprep.mubr.msk.f32.mxu1 %vm768_vm2, %v760_v8  ;;  %v763_v28 = vld [vmem:[%s2190_s6 + $0xf8] sm:$0xff] }
 0x120   : > { %v2360_v49 = vpop.eup %1887  ;;  %706 = vst.msk [vmem:[%s2200_s29 + $0x30] sm:$0xff] %vm567_vm1, %v1886_v46  ;;  %1907 = vrsqrt.f32 %v655_v36  ;;  %1112 = vperm.xlu0 %1869, %v1882_v38   ;;  %v633_v0 = vld [vmem:[#allocation2 + $0xe8] sm:$0xff]  ;;  %v632_v5 = vld [vmem:[#allocation2 + $0xe0] sm:$0xff] }
 0x121   : > { %v2368_v54 = vpop.eup %1889  ;;  %709 = vst.msk [vmem:[%s2200_s29 + $0x48] sm:$0xff] %vm567_vm1, %v2360_v49  ;;  %1909 = vrsqrt.f32 %v654_v41  ;;  %v665_v12 = vadd.f32 1.0, %v633_v0  ;;  %v664_v15 = vadd.f32 1.0, %v632_v5  ;;  %1752 = vmatmul.mubr.msk.f32.gmra.mrb[12].mxu0 %vm768_vm2, %v745_v17 }
 0x122   : > { %v2375_v59 = vpop.eup %1891  ;;  %708 = vst.msk [vmem:[%s2200_s29 + $0x40] sm:$0xff] %vm567_vm1, %v2368_v54  ;;  %1911 = vrsqrt.f32 %v657_v44  ;;  %1127 = vperm.xlu1 %1870, %v1884_v43   ;;  %1776 = vmatmul.mubr.msk.f32.gmra.mrb[12].mxu1 %vm768_vm2, %v761_v18 }
 0x123   : > { %v2380_v62 = vpop.eup %1893  ;;  %711 = vst.msk [vmem:[%s2200_s29 + $0x58] sm:$0xff] %vm567_vm1, %v2375_v59  ;;  %1913 = vrsqrt.f32 %v656_v47  ;;  %1754 = vmatprep.mubr.msk.f32.mxu0 %vm768_vm2, %v746_v21  ;;  %1778 = vmatprep.mubr.msk.f32.mxu1 %vm768_vm2, %v762_v22 }
 0x124   : > { %v2387_v1 = vpop.eup %1895  ;;  %710 = vst.msk [vmem:[%s2200_s29 + $0x50] sm:$0xff] %vm567_vm1, %v2380_v62  ;;  %1915 = vrsqrt.f32 %v659_v52  ;;  %v635_v10 = vld [vmem:[#allocation2 + $0xf8] sm:$0xff]  ;;  %1122 = vperm.xlu0 %1869, %v1886_v46   ;;  %v634_v13 = vld [vmem:[#allocation2 + $0xf0] sm:$0xff] }
 0x125   : > { %v2396_v6 = vpop.eup %1897  ;;  %713 = vst.msk [vmem:[%s2200_s29 + $0x68] sm:$0xff] %vm567_vm1, %v2387_v1  ;;  %1917 = vrsqrt.f32 %v658_v57  ;;  %v667_v19 = vadd.f32 1.0, %v635_v10  ;;  %v666_v23 = vadd.f32 1.0, %v634_v13  ;;  %1755 = vmatmul.mubr.msk.f32.gmra.mrb[14].mxu0 %vm768_vm2, %v747_v27 }
 0x126   : > { %v2403_v11 = vpop.eup %1899  ;;  %712 = vst.msk [vmem:[%s2200_s29 + $0x60] sm:$0xff] %vm567_vm1, %v2396_v6  ;;  %1919 = vrsqrt.f32 %v661_v60  ;;  %1137 = vperm.xlu1 %1870, %v2360_v49   ;;  %1779 = vmatmul.mubr.msk.f32.gmra.mrb[14].mxu1 %vm768_vm2, %v763_v28 }
 0x127   : > { %v2408_v14 = vpop.eup %1901  ;;  %715 = vst.msk [vmem:[%s2200_s29 + $0x78] sm:$0xff] %vm567_vm1, %v2403_v11  ;;  %1921 = vrsqrt.f32 %v660_v63 }
 0x128   : > { %v2415_v16 = vpop.eup %1903  ;;  %714 = vst.msk [vmem:[%s2200_s29 + $0x70] sm:$0xff] %vm567_vm1, %v2408_v14  ;;  %1923 = vrsqrt.f32 %v663_v4  ;;  %1132 = vperm.xlu0 %1869, %v2368_v54  }
 0x129   : > { %v1906_v20 = vpop.eup %1905  ;;  %717 = vst.msk [vmem:[%s2200_s29 + $0x88] sm:$0xff] %vm567_vm1, %v2415_v16  ;;  %1925 = vrsqrt.f32 %v662_v9 }
 0x12a   : > { %v1908_v24 = vpop.eup %1907  ;;  %716 = vst.msk [vmem:[%s2200_s29 + $0x80] sm:$0xff] %vm567_vm1, %v1906_v20  ;;  %1927 = vrsqrt.f32 %v665_v12  ;;  %1147 = vperm.xlu1 %1870, %v2375_v59  }
 0x12b   : > { %v1910_v25 = vpop.eup %1909  ;;  %719 = vst.msk [vmem:[%s2200_s29 + $0x98] sm:$0xff] %vm567_vm1, %v1908_v24  ;;  %1929 = vrsqrt.f32 %v664_v15 }
 0x12c   : > { %v1912_v26 = vpop.eup %1911  ;;  %718 = vst.msk [vmem:[%s2200_s29 + $0x90] sm:$0xff] %vm567_vm1, %v1910_v25  ;;  %1931 = vrsqrt.f32 %v667_v19  ;;  %1142 = vperm.xlu0 %1869, %v2380_v62  }
 0x12d   : > { %v1914_v29 = vpop.eup %1913  ;;  %721 = vst.msk [vmem:[%s2200_s29 + $0xa8] sm:$0xff] %vm567_vm1, %v1912_v26  ;;  %1933 = vrsqrt.f32 %v666_v23 }
 0x12e   : > { %v1916_v30 = vpop.eup %1915  ;;  %720 = vst.msk [vmem:[%s2200_s29 + $0xa0] sm:$0xff] %vm567_vm1, %v1914_v29  ;;  %1157 = vperm.xlu1 %1870, %v2387_v1  }
 0x12f   : > { %v1918_v31 = vpop.eup %1917  ;;  %723 = vst.msk [vmem:[%s2200_s29 + $0xb8] sm:$0xff] %vm567_vm1, %v1916_v30 }
 0x130   : > { %v1920_v32 = vpop.eup %1919  ;;  %722 = vst.msk [vmem:[%s2200_s29 + $0xb0] sm:$0xff] %vm567_vm1, %v1918_v31  ;;  %1152 = vperm.xlu0 %1869, %v2396_v6  }
 0x131   : > { %v1922_v33 = vpop.eup %1921  ;;  %725 = vst.msk [vmem:[%s2200_s29 + $0xc8] sm:$0xff] %vm567_vm1, %v1920_v32 }
 0x132   : > { %v1924_v34 = vpop.eup %1923  ;;  %724 = vst.msk [vmem:[%s2200_s29 + $0xc0] sm:$0xff] %vm567_vm1, %v1922_v33  ;;  %1167 = vperm.xlu1 %1870, %v2403_v11  }
 0x133   : > { %v1926_v35 = vpop.eup %1925  ;;  %727 = vst.msk [vmem:[%s2200_s29 + $0xd8] sm:$0xff] %vm567_vm1, %v1924_v34 }
 0x134   : > { %v1928_v36 = vpop.eup %1927  ;;  %726 = vst.msk [vmem:[%s2200_s29 + $0xd0] sm:$0xff] %vm567_vm1, %v1926_v35  ;;  %1162 = vperm.xlu0 %1869, %v2408_v14  }
 0x135   : > { %v1930_v37 = vpop.eup %1929  ;;  %729 = vst.msk [vmem:[%s2200_s29 + $0xe8] sm:$0xff] %vm567_vm1, %v1928_v36 }
 0x136   : > { %v1932_v38 = vpop.eup %1931  ;;  %728 = vst.msk [vmem:[%s2200_s29 + $0xe0] sm:$0xff] %vm567_vm1, %v1930_v37  ;;  %1177 = vperm.xlu1 %1870, %v2415_v16  }
 0x137   : > { %v1934_v39 = vpop.eup %1933  ;;  %731 = vst.msk [vmem:[%s2200_s29 + $0xf8] sm:$0xff] %vm567_vm1, %v1932_v38 }
 0x138   : > { %730 = vst.msk [vmem:[%s2200_s29 + $0xf0] sm:$0xff] %vm567_vm1, %v1934_v39  ;;  %1172 = vperm.xlu0 %1869, %v1906_v20  }
 0x13a   : > { %1187 = vperm.xlu1 %1870, %v1908_v24  }
 0x13c   : > { %1182 = vperm.xlu0 %1869, %v1910_v25  }
 0x13e   : > { %1197 = vperm.xlu1 %1870, %v1912_v26  }
 0x140   : > { %1192 = vperm.xlu0 %1869, %v1914_v29  }
 0x142   : > { %1207 = vperm.xlu1 %1870, %v1916_v30  }
 0x144   : > { %1202 = vperm.xlu0 %1869, %v1918_v31  }
 0x146   : > { %1217 = vperm.xlu1 %1870, %v1920_v32  }
 0x148   : > { %1212 = vperm.xlu0 %1869, %v1922_v33  }
 0x14a   : > { %1227 = vperm.xlu1 %1870, %v1924_v34  }
 0x14c   : > { %1222 = vperm.xlu0 %1869, %v1926_v35  }
 0x14e   : > { %1237 = vperm.xlu1 %1870, %v1928_v36  }
 0x150   : > { %1232 = vperm.xlu0 %1869, %v1930_v37  }
 0x152   : > { %1247 = vperm.xlu1 %1870, %v1932_v38  }
 0x154   : > { %1242 = vperm.xlu0 %1869, %v1934_v39  }
 0x191   : > { %v1103_v40 = vpop.permute.xlu1 %1102 }
 0x195   : > { %v1093_v41 = vpop.permute.xlu0 %1092 }
 0x199   : > { %v1108_v42 = vpop.permute.xlu1 %1107 }
 0x19b   : > { %v1098_v43 = vpop.permute.xlu0 %1097 }
 0x19d   : > { %v1118_v44 = vpop.permute.xlu1 %1117 }
 0x19f   : > { %v1113_v45 = vpop.permute.xlu0 %1112 }
 0x1a1   : > { %v2476_v46 = vpop.permute.xlu1 %1127 }
 0x1a3   : > { %v2478_v47 = vpop.permute.xlu0 %1122 }
 0x1a5   : > { %v2480_v48 = vpop.permute.xlu1 %1137 }
 0x1a7   : > { %v2482_v49 = vpop.permute.xlu0 %1132 }
 0x1a9   : > { %v2484_v50 = vpop.permute.xlu1 %1147 }
 0x1ab   : > { %v2486_v51 = vpop.permute.xlu0 %1142 }
 0x1ad   : > { %v2488_v52 = vpop.permute.xlu1 %1157 }
 0x1af   : > { %v2490_v53 = vpop.permute.xlu0 %1152 }
 0x1b1   : > { %v2492_v54 = vpop.permute.xlu1 %1167 }
 0x1b3   : > { %v2494_v55 = vpop.permute.xlu0 %1162 }
 0x1b5   : > { %v1178_v56 = vpop.permute.xlu1 %1177 }
 0x1b7   : > { %v1173_v57 = vpop.permute.xlu0 %1172 }
 0x1b9   : > { %v1188_v58 = vpop.permute.xlu1 %1187 }
 0x1bb   : > { %v1183_v59 = vpop.permute.xlu0 %1182 }
 0x1bd   : > { %v1198_v60 = vpop.permute.xlu1 %1197 }
 0x1bf   : > { %v1193_v61 = vpop.permute.xlu0 %1192 }
 0x1c1   : > { %v1208_v62 = vpop.permute.xlu1 %1207 }
 0x1c3   : > { %v1203_v63 = vpop.permute.xlu0 %1202 }
 0x1c5   : > { %v1218_v8 = vpop.permute.xlu1 %1217 }
 0x1c7   : > { %v2496_v9 = vpop.permute.xlu0 %1212 }
 0x1c9   : > { %v1228_v34 = vpop.permute.xlu1 %1227 }
 0x1cb   : > { %v1223_v35 = vpop.permute.xlu0 %1222 }
 0x1d4   : > { %v1735_v0 = vpop.f32.mrb[0].mxu0 }
 0x1d5   : > { %v1759_v1 = vpop.f32.mrb[0].mxu1  ;;  %v1251_v2 = vmul.f32 %v1735_v0, %v1098_v43  ;;  %v931_v4 = vpop.f32.mrb[1].mxu0 }
 0x1d6   : > { %v1267_v3 = vmul.f32 %v1759_v1, %v1178_v56  ;;  %v1011_v5 = vpop.f32.mrb[1].mxu1  ;;  %v1250_v6 = vmul.f32 %v1093_v41, %v931_v4  ;;  %v1238_v4 = vpop.permute.xlu1 %1237 }
 0x1d7   : > { %v1266_v7 = vmul.f32 %v1173_v57, %v1011_v5  ;;  %v1658_v10 = vpack.c.bf16 %v1251_v2, %v1251_v2  ;;  %v1233_v5 = vpop.permute.xlu0 %1232 }
 0x1d8   : > { %v1674_v11 = vpack.c.bf16 %v1267_v3, %v1267_v3  ;;  %v1657_v12 = vpack.c.bf16 %v1250_v6, %v1250_v6 }
 0x1d9   : > { %v1673_v13 = vpack.c.bf16 %v1266_v7, %v1266_v7  ;;  %1412 = vst.msk [vmem:[%s2195_s14 + $0x4] sm:$0xf] %vm1410_vm3, %v1658_v10 }
 0x1da   : > { %1428 = vst.msk [vmem:[%s2195_s14 + $0x44] sm:$0xf] %vm1410_vm3, %v1674_v11  ;;  %1411 = vst.msk [vmem:[%s2195_s14] sm:$0xf] %vm1410_vm3, %v1657_v12 }
 0x1db   : > { %v1738_v14 = vpop.f32.mrb[2].mxu0  ;;  %1427 = vst.msk [vmem:[%s2195_s14 + $0x40] sm:$0xf] %vm1410_vm3, %v1673_v13 }
 0x1dc   : > { %v1253_v16 = vmul.f32 %v1738_v14, %v1108_v42  ;;  %v941_v18 = vpop.f32.mrb[3].mxu0 }
 0x1dd   : > { %v1762_v15 = vpop.f32.mrb[2].mxu1  ;;  %v1252_v20 = vmul.f32 %v1103_v40, %v941_v18 }
 0x1de   : > { %v1269_v17 = vmul.f32 %v1762_v15, %v1188_v58  ;;  %v1021_v19 = vpop.f32.mrb[3].mxu1  ;;  %v1660_v22 = vpack.c.bf16 %v1253_v16, %v1253_v16 }
 0x1df   : > { %v1268_v21 = vmul.f32 %v1183_v59, %v1021_v19  ;;  %v1659_v24 = vpack.c.bf16 %v1252_v20, %v1252_v20 }
 0x1e0   : > { %v1676_v23 = vpack.c.bf16 %v1269_v17, %v1269_v17  ;;  %1414 = vst.msk [vmem:[%s2195_s14 + $0xc] sm:$0xf] %vm1410_vm3, %v1660_v22 }
 0x1e1   : > { %v1675_v25 = vpack.c.bf16 %v1268_v21, %v1268_v21  ;;  %v1741_v26 = vpop.f32.mrb[4].mxu0  ;;  %1413 = vst.msk [vmem:[%s2195_s14 + $0x8] sm:$0xf] %vm1410_vm3, %v1659_v24 }
 0x1e2   : > { %1430 = vst.msk [vmem:[%s2195_s14 + $0x4c] sm:$0xf] %vm1410_vm3, %v1676_v23  ;;  %v1255_v28 = vmul.f32 %v1741_v26, %v1118_v44  ;;  %v951_v30 = vpop.f32.mrb[5].mxu0  ;;  %v1248_v26 = vpop.permute.xlu1 %1247 }
 0x1e3   : > { %v1765_v27 = vpop.f32.mrb[4].mxu1  ;;  %1429 = vst.msk [vmem:[%s2195_s14 + $0x48] sm:$0xf] %vm1410_vm3, %v1675_v25  ;;  %v1254_v32 = vmul.f32 %v1113_v45, %v951_v30 }
 0x1e4   : > { %v1271_v29 = vmul.f32 %v1765_v27, %v1198_v60  ;;  %v1031_v31 = vpop.f32.mrb[5].mxu1  ;;  %v1662_v36 = vpack.c.bf16 %v1255_v28, %v1255_v28  ;;  %v1243_v27 = vpop.permute.xlu0 %1242 }
 0x1e5   : > { %v1270_v33 = vmul.f32 %v1193_v61, %v1031_v31  ;;  %v1661_v38 = vpack.c.bf16 %v1254_v32, %v1254_v32 }
 0x1e6   : > { %v1678_v37 = vpack.c.bf16 %v1271_v29, %v1271_v29  ;;  %1416 = vst.msk [vmem:[%s2195_s14 + $0x14] sm:$0xf] %vm1410_vm3, %v1662_v36 }
 0x1e7   : > { %v1677_v39 = vpack.c.bf16 %v1270_v33, %v1270_v33  ;;  %1415 = vst.msk [vmem:[%s2195_s14 + $0x10] sm:$0xf] %vm1410_vm3, %v1661_v38 }
 0x1e8   : > { %v1744_v40 = vpop.f32.mrb[6].mxu0  ;;  %1432 = vst.msk [vmem:[%s2195_s14 + $0x54] sm:$0xf] %vm1410_vm3, %v1678_v37 }
 0x1e9   : > { %v1768_v41 = vpop.f32.mrb[6].mxu1  ;;  %v1257_v42 = vmul.f32 %v1744_v40, %v2476_v46  ;;  %v961_v44 = vpop.f32.mrb[7].mxu0  ;;  %1431 = vst.msk [vmem:[%s2195_s14 + $0x50] sm:$0xf] %vm1410_vm3, %v1677_v39 }
 0x1ea   : > { %v1273_v43 = vmul.f32 %v1768_v41, %v1208_v62  ;;  %v1041_v45 = vpop.f32.mrb[7].mxu1  ;;  %v1256_v56 = vmul.f32 %v2478_v47, %v961_v44 }
 0x1eb   : > { %v1272_v57 = vmul.f32 %v1203_v63, %v1041_v45  ;;  %v1664_v58 = vpack.c.bf16 %v1257_v42, %v1257_v42 }
 0x1ec   : > { %v1680_v59 = vpack.c.bf16 %v1273_v43, %v1273_v43  ;;  %v1663_v60 = vpack.c.bf16 %v1256_v56, %v1256_v56  ;;  %v1747_v0 = vpop.f32.mrb[8].mxu0 }
 0x1ed   : > { %v1679_v61 = vpack.c.bf16 %v1272_v57, %v1272_v57  ;;  %v1771_v1 = vpop.f32.mrb[8].mxu1  ;;  %1418 = vst.msk [vmem:[%s2195_s14 + $0x1c] sm:$0xf] %vm1410_vm3, %v1664_v58  ;;  %v1259_v46 = vmul.f32 %v1747_v0, %v2480_v48  ;;  %v971_v2 = vpop.f32.mrb[9].mxu0 }
 0x1ee   : > { %1434 = vst.msk [vmem:[%s2195_s14 + $0x5c] sm:$0xf] %vm1410_vm3, %v1680_v59  ;;  %v1275_v62 = vmul.f32 %v1771_v1, %v1218_v8  ;;  %v1051_v3 = vpop.f32.mrb[9].mxu1  ;;  %1417 = vst.msk [vmem:[%s2195_s14 + $0x18] sm:$0xf] %vm1410_vm3, %v1663_v60  ;;  %v1258_v47 = vmul.f32 %v2482_v49, %v971_v2 }
 0x1ef   : > { %1433 = vst.msk [vmem:[%s2195_s14 + $0x58] sm:$0xf] %vm1410_vm3, %v1679_v61  ;;  %v1274_v63 = vmul.f32 %v2496_v9, %v1051_v3  ;;  %v1666_v6 = vpack.c.bf16 %v1259_v46, %v1259_v46 }
 0x1f0   : > { %v1682_v7 = vpack.c.bf16 %v1275_v62, %v1275_v62  ;;  %v1665_v48 = vpack.c.bf16 %v1258_v47, %v1258_v47  ;;  %v1750_v8 = vpop.f32.mrb[10].mxu0 }
 0x1f1   : > { %v1681_v10 = vpack.c.bf16 %v1274_v63, %v1274_v63  ;;  %v1774_v11 = vpop.f32.mrb[10].mxu1  ;;  %1420 = vst.msk [vmem:[%s2195_s14 + $0x24] sm:$0xf] %vm1410_vm3, %v1666_v6  ;;  %v1261_v49 = vmul.f32 %v1750_v8, %v2484_v50  ;;  %v981_v13 = vpop.f32.mrb[11].mxu0 }
 0x1f2   : > { %1436 = vst.msk [vmem:[%s2195_s14 + $0x64] sm:$0xf] %vm1410_vm3, %v1682_v7  ;;  %v1277_v12 = vmul.f32 %v1774_v11, %v1228_v34  ;;  %v1061_v9 = vpop.f32.mrb[11].mxu1  ;;  %1419 = vst.msk [vmem:[%s2195_s14 + $0x20] sm:$0xf] %vm1410_vm3, %v1665_v48  ;;  %v1260_v14 = vmul.f32 %v2486_v51, %v981_v13 }
 0x1f3   : > { %1435 = vst.msk [vmem:[%s2195_s14 + $0x60] sm:$0xf] %vm1410_vm3, %v1681_v10  ;;  %v1276_v15 = vmul.f32 %v1223_v35, %v1061_v9  ;;  %v1668_v16 = vpack.c.bf16 %v1261_v49, %v1261_v49 }
 0x1f4   : > { %v1684_v17 = vpack.c.bf16 %v1277_v12, %v1277_v12  ;;  %v1667_v18 = vpack.c.bf16 %v1260_v14, %v1260_v14  ;;  %v1753_v20 = vpop.f32.mrb[12].mxu0 }
 0x1f5   : > { %v1683_v19 = vpack.c.bf16 %v1276_v15, %v1276_v15  ;;  %v1777_v21 = vpop.f32.mrb[12].mxu1  ;;  %1422 = vst.msk [vmem:[%s2195_s14 + $0x2c] sm:$0xf] %vm1410_vm3, %v1668_v16  ;;  %v1263_v50 = vmul.f32 %v1753_v20, %v2488_v52  ;;  %v991_v23 = vpop.f32.mrb[13].mxu0 }
 0x1f6   : > { %1438 = vst.msk [vmem:[%s2195_s14 + $0x6c] sm:$0xf] %vm1410_vm3, %v1684_v17  ;;  %v1279_v22 = vmul.f32 %v1777_v21, %v1238_v4  ;;  %v1071_v24 = vpop.f32.mrb[13].mxu1  ;;  %1421 = vst.msk [vmem:[%s2195_s14 + $0x28] sm:$0xf] %vm1410_vm3, %v1667_v18  ;;  %v1262_v51 = vmul.f32 %v2490_v53, %v991_v23 }
 0x1f7   : > { %1437 = vst.msk [vmem:[%s2195_s14 + $0x68] sm:$0xf] %vm1410_vm3, %v1683_v19  ;;  %v1278_v25 = vmul.f32 %v1233_v5, %v1071_v24  ;;  %v1670_v28 = vpack.c.bf16 %v1263_v50, %v1263_v50 }
 0x1f8   : > { %v1686_v29 = vpack.c.bf16 %v1279_v22, %v1279_v22  ;;  %v1669_v30 = vpack.c.bf16 %v1262_v51, %v1262_v51  ;;  %v1756_v31 = vpop.f32.mrb[14].mxu0 }
 0x1f9   : > { %v1685_v52 = vpack.c.bf16 %v1278_v25, %v1278_v25  ;;  %v1780_v32 = vpop.f32.mrb[14].mxu1  ;;  %1424 = vst.msk [vmem:[%s2195_s14 + $0x34] sm:$0xf] %vm1410_vm3, %v1670_v28  ;;  %v1265_v53 = vmul.f32 %v1756_v31, %v2492_v54  ;;  %v1001_v34 = vpop.f32.mrb[15].mxu0 }
 0x1fa   : > { %1440 = vst.msk [vmem:[%s2195_s14 + $0x74] sm:$0xf] %vm1410_vm3, %v1686_v29  ;;  %v1281_v33 = vmul.f32 %v1780_v32, %v1248_v26  ;;  %v1081_v35 = vpop.f32.mrb[15].mxu1  ;;  %1423 = vst.msk [vmem:[%s2195_s14 + $0x30] sm:$0xf] %vm1410_vm3, %v1669_v30  ;;  %v1264_v36 = vmul.f32 %v2494_v55, %v1001_v34 }
 0x1fb   : > { %1439 = vst.msk [vmem:[%s2195_s14 + $0x70] sm:$0xf] %vm1410_vm3, %v1685_v52  ;;  %v1280_v37 = vmul.f32 %v1243_v27, %v1081_v35  ;;  %v1672_v38 = vpack.c.bf16 %v1265_v53, %v1265_v53 }
 0x1fc   : > { %v1688_v39 = vpack.c.bf16 %v1281_v33, %v1281_v33  ;;  %v1671_v40 = vpack.c.bf16 %v1264_v36, %v1264_v36 }
 0x1fd   : > { %v1687_v41 = vpack.c.bf16 %v1280_v37, %v1280_v37  ;;  %1426 = vst.msk [vmem:[%s2195_s14 + $0x3c] sm:$0xf] %vm1410_vm3, %v1672_v38 }
 0x1fe   : > { %1442 = vst.msk [vmem:[%s2195_s14 + $0x7c] sm:$0xf] %vm1410_vm3, %v1688_v39  ;;  %1425 = vst.msk [vmem:[%s2195_s14 + $0x38] sm:$0xf] %vm1410_vm3, %v1671_v40 }
 0x1ff   : > { %1441 = vst.msk [vmem:[%s2195_s14 + $0x78] sm:$0xf] %vm1410_vm3, %v1687_v41 }
 0x200 PF: > { %s18_s22 = sadd.s32 1, %s2031_s22   ;;  %s2607_s13 = sld [smem:[#allocation6_spill]] }
 0x201   : > { %p15_p6 = scmp.ge.s32.totalorder %s18_s22, 6   ;;  %s2608_s15 = smov %s2007_s16 }
 0x202   : > { %s2609_s16 = smov %s2011_s17  ;;  %s2610_s17 = smov %s2131_s9 }
 0x203   : > { %s2611_s18 = smov %s2023_s20  ;;  %s2612_s19 = smov %s2027_s21 }
 0x204   : > { %s2614_s21 = smov %s2620_s25  ;;  %17 = sbr.rel (!%p15_p6) target bundleno = 5 (0x5), region = 95 }
 0x206   : > { %s2613_s20 = smov %s2607_s13 }
 0x20b   :  { %1482 = vsyncpa [#allocation4], 1 }
 0x20c   :  { %1484 = vsyncpa [#allocation4 + $0x1], 1 }

</bundles_post_ra>
